<compile_context>
chip_gen: v7x
topology: tpu7x:2x2x1
jax: 0.10.0
libtpu: 0.0.40
codegen_flags: <defaults>
</compile_context>

<pallas_src>
import functools

import jax
import jax.numpy as jnp
from jax.experimental import pallas as pl
from jax.experimental.pallas import tpu as pltpu


def _round_up(x: int, m: int) -> int:
    return (x + m - 1) // m * m


def cnn_kernel(x_ref, wc_ref, bc_ref, wf_ref, bf_ref, out_ref, *,
               K, out_len, out_len_pad):
    # x_ref : (TB, L_pad, E_pad)   bf16 embeddings (padded rows/lanes = 0)
    # wc_ref: (K*E_pad, F_pad)     bf16 im2col conv weight, row = k*E_pad + e
    # bc_ref: (1, F_pad)           f32 conv bias (zero-padded)
    # wf_ref: (F_pad, C_pad)       f32 fc weight (zero-padded)
    # bf_ref: (1, C_pad)           f32 fc bias (zero-padded)
    # out_ref:(TB, C_pad)          f32 logits for this batch tile (lane-dense)
    TB, L_pad, E_pad = x_ref.shape
    KE, F_pad = wc_ref.shape

    # im2col assembly entirely in bf16: K shifted sublane-window loads,
    # lane-concatenated into (TB, out_len_pad, K*E_pad).  No f32 detour.
    taps = [x_ref[:, k:k + out_len_pad, :] for k in range(K)]
    patches = jnp.concatenate(taps, axis=-1)                  # (TB, olp, KE) bf16
    patches = patches.reshape(TB * out_len_pad, KE)           # (M, KE), M>=512

    # Conv1d(valid) + bias + ReLU: one MXU matmul, f32 accumulation.
    acc = jnp.dot(patches, wc_ref[...],
                  preferred_element_type=jnp.float32)         # (M, F_pad) f32
    acc = jnp.maximum(acc + bc_ref[...], 0.0)

    # Global max pool over valid time positions, per batch row.
    acc3 = acc.reshape(TB, out_len_pad, F_pad)
    if out_len != out_len_pad:
        # Mask padded time steps BEFORE the max; 0 is safe only because ReLU
        # made every valid value >= 0 (otherwise this must be -inf).
        t = jax.lax.broadcasted_iota(jnp.int32, acc3.shape, 1)
        acc3 = jnp.where(t < out_len, acc3, 0.0)
    pooled = jnp.max(acc3, axis=1)                            # (TB, F_pad) f32

    # Final linear layer kept in f32 (tiny matmul) to avoid a second bf16
    # rounding; lane-dense (TB, C_pad) store.
    logits = jnp.dot(pooled, wf_ref[...],
                     preferred_element_type=jnp.float32) + bf_ref[...]
    out_ref[...] = logits.astype(out_ref.dtype)


def cnn_forward_pallas(emb, w_conv, b_conv, w_fc, b_fc):
    """emb: (B, L, E) f32; w_conv: (F, E, K) [PyTorch Conv1d]; b_conv: (F,);
    w_fc: (C, F) [PyTorch Linear]; b_fc: (C,).  Returns (B, C) f32 logits."""
    B, L, E = emb.shape
    F, _, K = w_conv.shape
    C = w_fc.shape[0]
    out_len = L - K + 1

    out_len_pad = max(8, _round_up(out_len, 8))
    L_pad = out_len_pad + K - 1
    E_pad = _round_up(E, 128)            # lane-dense embedding dim
    KE = K * E_pad                        # im2col contraction (multiple of 128)
    F_pad = _round_up(F, 128)            # lane-dense filters
    C_pad = _round_up(C, 128)            # lane-dense output store

    # Per-generation VMEM budget (v5e/v6e: 128 MiB, v7x: 64 MiB per core).
    try:
        phys_vmem = int(pltpu.get_tpu_info().vmem_capacity_bytes)
    except Exception:
        phys_vmem = 64 * 1024 * 1024     # conservative fallback (v7x)
    vmem_budget = (phys_vmem * 3) // 4   # headroom for compiler scratch/sems

    # Batch tile: target conv matmul M = TB*out_len_pad >= 512 and FC M >= 32.
    TB = _round_up(max(32, -(-512 // out_len_pad)), 8)
    TB = min(TB, 128)
    # For large production B keep >= 4 batch tiles (2 per TensorCore on v7x)
    # so the megacore split and DMA/compute pipelining have work.
    if B >= 4 * 32:
        TB = min(TB, _round_up(-(-B // 4), 8))

    def _step_bytes(tb):
        x_t = tb * L_pad * E_pad * 2                       # bf16 input tile
        out_t = tb * C_pad * 4                             # f32 output tile
        w_t = KE * F_pad * 2 + F_pad * 4 + F_pad * C_pad * 4 + C_pad * 4
        scratch = tb * out_len_pad * (KE * 2 + 2 * F_pad * 4)  # patches + acc
        return 2 * x_t + 2 * out_t + 2 * w_t + scratch     # double-buffered

    while TB > 8 and _step_bytes(TB) > vmem_budget // 2:
        TB -= 8

    B_pad = _round_up(B, TB)
    vmem_limit = int(min(max(4 * _step_bytes(TB), 32 * 1024 * 1024),
                         vmem_budget))

    # Layout plumbing (zero-pad + repack).  All padding is inert: padded
    # filters have zero weight & bias (-> relu(0)=0 pooled), padded fc
    # rows/cols are zero, padded batch rows are sliced off below, padded E
    # lanes are zero in both x and the conv weight.
    emb_p = jnp.zeros((B_pad, L_pad, E_pad), jnp.bfloat16)
    emb_p = emb_p.at[:B, :L, :E].set(emb.astype(jnp.bfloat16))

    wc_kef = jnp.zeros((K, E_pad, F_pad), jnp.bfloat16)
    wc_kef = wc_kef.at[:, :E, :F].set(
        jnp.transpose(w_conv, (2, 1, 0)).astype(jnp.bfloat16))
    wc_p = wc_kef.reshape(KE, F_pad)                       # row = k*E_pad + e

    bc_p = jnp.zeros((1, F_pad), jnp.float32).at[0, :F].set(b_conv)
    wf_p = jnp.zeros((F_pad, C_pad), jnp.float32).at[:F, :C].set(w_fc.T)
    bf_p = jnp.zeros((1, C_pad), jnp.float32).at[0, :C].set(b_fc)

    out = pl.pallas_call(
        functools.partial(cnn_kernel, K=K, out_len=out_len,
                          out_len_pad=out_len_pad),
        out_shape=jax.ShapeDtypeStruct((B_pad, C_pad), jnp.float32),
        grid=(B_pad // TB,),
        in_specs=[
            pl.BlockSpec((TB, L_pad, E_pad), lambda b: (b, 0, 0)),
            # Grid-invariant weights: constant block index -> not re-DMA'd
            # across batch tiles.
            pl.BlockSpec((KE, F_pad), lambda b: (0, 0)),
            pl.BlockSpec((1, F_pad), lambda b: (0, 0)),
            pl.BlockSpec((F_pad, C_pad), lambda b: (0, 0)),
            pl.BlockSpec((1, C_pad), lambda b: (0, 0)),
        ],
        # Per-tile output block so the batch axis can shard across the two
        # TensorCores on v7x.
        out_specs=pl.BlockSpec((TB, C_pad), lambda b: (b, 0)),
        compiler_params=pltpu.CompilerParams(
            dimension_semantics=("parallel",),
            vmem_limit_bytes=vmem_limit,
        ),
    )(emb_p, wc_p, bc_p, wf_p, bf_p)
    return out[:B, :C]


def ref_forward(emb, w_conv, b_conv, w_fc, b_fc):
    """Pure-JAX f32 reference with the PyTorch module's semantics."""
    B, L, E = emb.shape
    F, _, K = w_conv.shape
    out_len = L - K + 1
    conv = sum(
        jnp.einsum("ble,fe->blf", emb[:, k:k + out_len, :], w_conv[:, :, k])
        for k in range(K)
    ) + b_conv                                    # (B, out_len, F)
    conv = jnp.maximum(conv, 0.0)
    pooled = jnp.max(conv, axis=1)                # (B, F)
    return pooled @ w_fc.T + b_fc                 # (B, C)


if __name__ == "__main__":
    # Small, deterministic configuration consistent with the module.
    B, L = 2, 16            # batch, sequence length
    vocab, E = 50, 32       # vocab size, embedding dim
    F, K = 100, 3           # num_filters (module default 100), kernel_size
    C = 8                   # num_classes

    key = jax.random.PRNGKey(0)
    k_tok, k_emb, k_wc, k_bc, k_wf, k_bf = jax.random.split(key, 6)

    tokens = jax.random.randint(k_tok, (B, L), 0, vocab, dtype=jnp.int32)
    emb_table = jax.random.normal(k_emb, (vocab, E), dtype=jnp.float32) * 0.1

    # Parameters in PyTorch-native shapes.
    w_conv = jax.random.normal(k_wc, (F, E, K), dtype=jnp.float32) * 0.05
    b_conv = jax.random.normal(k_bc, (F,), dtype=jnp.float32) * 0.05
    w_fc = jax.random.normal(k_wf, (C, F), dtype=jnp.float32) * 0.05
    b_fc = jax.random.normal(k_bf, (C,), dtype=jnp.float32) * 0.05

    # Embedding lookup stays in XLA (single fused gather); the mask returned
    # by the embedding layer is unused by the forward pass.
    # TODO(synk): at production L/E, fuse the gather into the kernel
    # (scalar-prefetch tokens + VMEM-resident table / DMA gather) to avoid the
    # extra HBM round trip on the (B, L, E) embedding tensor.
    emb = jnp.take(emb_table, tokens, axis=0)     # (B, L, E)

    out = cnn_forward_pallas(emb, w_conv, b_conv, w_fc, b_fc)
    out = jax.block_until_ready(out)

    ref = ref_forward(emb, w_conv, b_conv, w_fc, b_fc)
    assert out.shape == (B, C), out.shape
    # Kernel uses bf16 MXU operands (embeddings/conv weight) with f32
    # accumulation and an f32 FC; reference is pure f32.
    assert jnp.allclose(out, ref, atol=5e-3, rtol=5e-2), (out, ref)

    print("KERNEL_OK")
</pallas_src>

<mosaic_0001>
module attributes {stable_mosaic.version = 11 : i64} {
  func.func @cnn_kernel(%arg0: i32, %arg1: memref<32x18x128xbf16, #tpu.memory_space<vmem>>, %arg2: memref<384x128xbf16, #tpu.memory_space<vmem>>, %arg3: memref<1x128xf32, #tpu.memory_space<vmem>>, %arg4: memref<128x128xf32, #tpu.memory_space<vmem>>, %arg5: memref<1x128xf32, #tpu.memory_space<vmem>>, %arg6: memref<32x128xf32, #tpu.memory_space<vmem>>) attributes {dimension_semantics = [#tpu.dimension_semantics<parallel>], iteration_bounds = array<i64: 1>, scalar_prefetch = 0 : i64, scratch_operands = 0 : i64, tpu.core_type = #tpu.core_type<tc>, window_params = [{transform_indices = @transform_0, window_bounds = array<i64: 32, 18, 128>}, {pipeline_mode = #tpu.pipeline_mode<synchronous>, transform_indices = @transform_1, window_bounds = array<i64: 384, 128>}, {pipeline_mode = #tpu.pipeline_mode<synchronous>, transform_indices = @transform_2, window_bounds = array<i64: 1, 128>}, {pipeline_mode = #tpu.pipeline_mode<synchronous>, transform_indices = @transform_3, window_bounds = array<i64: 128, 128>}, {pipeline_mode = #tpu.pipeline_mode<synchronous>, transform_indices = @transform_4, window_bounds = array<i64: 1, 128>}, {transform_indices = @transform_5, window_bounds = array<i64: 32, 128>}]} {
    %c0 = arith.constant 0 : index
    %c0_0 = arith.constant 0 : index
    %c0_1 = arith.constant 0 : index
    %0 = vector.load %arg1[%c0, %c0_0, %c0_1] : memref<32x18x128xbf16, #tpu.memory_space<vmem>>, vector<32x16x128xbf16>
    %c0_2 = arith.constant 0 : index
    %c1 = arith.constant 1 : index
    %c0_3 = arith.constant 0 : index
    %1 = vector.load %arg1[%c0_2, %c1, %c0_3] : memref<32x18x128xbf16, #tpu.memory_space<vmem>>, vector<32x16x128xbf16>
    %c0_4 = arith.constant 0 : index
    %c2 = arith.constant 2 : index
    %c0_5 = arith.constant 0 : index
    %2 = vector.load %arg1[%c0_4, %c2, %c0_5] : memref<32x18x128xbf16, #tpu.memory_space<vmem>>, vector<32x16x128xbf16>
    %3 = tpu.concatenate %0, %1, %2 in 2 : vector<32x16x128xbf16>, vector<32x16x128xbf16>, vector<32x16x128xbf16> -> vector<32x16x384xbf16>
    %4 = vector.shape_cast %3 : vector<32x16x384xbf16> to vector<512x384xbf16>
    %c0_6 = arith.constant 0 : index
    %c0_7 = arith.constant 0 : index
    %5 = vector.load %arg2[%c0_6, %c0_7] : memref<384x128xbf16, #tpu.memory_space<vmem>>, vector<384x128xbf16>
    %cst = arith.constant dense<0.000000e+00> : vector<512x128xf32>
    %6 = tpu.matmul %4, %5, %cst {dimension_numbers = #tpu.dot_dimension_numbers<[1], [0], [0], [1], [0, 0, 1, 1], [], []>} : vector<512x384xbf16>, vector<384x128xbf16>, vector<512x128xf32> -> vector<512x128xf32>
    %c0_8 = arith.constant 0 : index
    %c0_9 = arith.constant 0 : index
    %7 = vector.load %arg3[%c0_8, %c0_9] : memref<1x128xf32, #tpu.memory_space<vmem>>, vector<1x128xf32>
    %8 = vector.broadcast %7 : vector<1x128xf32> to vector<512x128xf32>
    %9 = arith.addf %6, %8 : vector<512x128xf32>
    %cst_10 = arith.constant 0.000000e+00 : f32
    %10 = vector.broadcast %cst_10 : f32 to vector<512x128xf32>
    %11 = arith.maximumf %9, %10 : vector<512x128xf32>
    %12 = vector.shape_cast %11 : vector<512x128xf32> to vector<32x16x128xf32>
    %13 = tpu.iota {dimensions = array<i32: 1>} : vector<32x16x128xi32>
    %c14_i32 = arith.constant 14 : i32
    %14 = vector.broadcast %c14_i32 : i32 to vector<32x16x128xi32>
    %15 = arith.cmpi slt, %13, %14 : vector<32x16x128xi32>
    %cst_11 = arith.constant 0.000000e+00 : f32
    %16 = vector.broadcast %cst_11 : f32 to vector<32x16x128xf32>
    %17 = arith.select %15, %12, %16 : vector<32x16x128xi1>, vector<32x16x128xf32>
    %cst_12 = arith.constant dense<0xFF800000> : vector<32x128xf32>
    %18 = vector.multi_reduction <maximumf>, %17, %cst_12 [1] : vector<32x16x128xf32> to vector<32x128xf32>
    %c0_13 = arith.constant 0 : index
    %c0_14 = arith.constant 0 : index
    %19 = vector.load %arg4[%c0_13, %c0_14] : memref<128x128xf32, #tpu.memory_space<vmem>>, vector<128x128xf32>
    %cst_15 = arith.constant dense<0.000000e+00> : vector<32x128xf32>
    %20 = tpu.matmul %18, %19, %cst_15 {dimension_numbers = #tpu.dot_dimension_numbers<[1], [0], [0], [1], [0, 0, 1, 1], [], []>} : vector<32x128xf32>, vector<128x128xf32>, vector<32x128xf32> -> vector<32x128xf32>
    %c0_16 = arith.constant 0 : index
    %c0_17 = arith.constant 0 : index
    %21 = vector.load %arg5[%c0_16, %c0_17] : memref<1x128xf32, #tpu.memory_space<vmem>>, vector<1x128xf32>
    %22 = vector.broadcast %21 : vector<1x128xf32> to vector<32x128xf32>
    %23 = arith.addf %20, %22 : vector<32x128xf32>
    %c0_18 = arith.constant 0 : index
    %c0_19 = arith.constant 0 : index
    %24 = vector.load %arg6[%c0_18, %c0_19] : memref<32x128xf32, #tpu.memory_space<vmem>>, vector<32x128xf32>
    tpu.vector_store %arg6[%c0_18, %c0_19], %23 {strides = array<i32>} : memref<32x128xf32, #tpu.memory_space<vmem>>, vector<32x128xf32>,
    return
  }
  func.func @transform_0(%arg0: i32) -> (i32, i32, i32) {
    %c0_i32 = arith.constant 0 : i32
    %c0_i32_0 = arith.constant 0 : i32
    %c0_i32_1 = arith.constant 0 : i32
    return %arg0, %c0_i32, %c0_i32_0 : i32, i32, i32
  }
  func.func @transform_1(%arg0: i32) -> (i32, i32) {
    %c0_i32 = arith.constant 0 : i32
    %c0_i32_0 = arith.constant 0 : i32
    %c0_i32_1 = arith.constant 0 : i32
    return %c0_i32, %c0_i32_0 : i32, i32
  }
  func.func @transform_2(%arg0: i32) -> (i32, i32) {
    %c0_i32 = arith.constant 0 : i32
    %c0_i32_0 = arith.constant 0 : i32
    %c0_i32_1 = arith.constant 0 : i32
    return %c0_i32, %c0_i32_0 : i32, i32
  }
  func.func @transform_3(%arg0: i32) -> (i32, i32) {
    %c0_i32 = arith.constant 0 : i32
    %c0_i32_0 = arith.constant 0 : i32
    %c0_i32_1 = arith.constant 0 : i32
    return %c0_i32, %c0_i32_0 : i32, i32
  }
  func.func @transform_4(%arg0: i32) -> (i32, i32) {
    %c0_i32 = arith.constant 0 : i32
    %c0_i32_0 = arith.constant 0 : i32
    %c0_i32_1 = arith.constant 0 : i32
    return %c0_i32, %c0_i32_0 : i32, i32
  }
  func.func @transform_5(%arg0: i32) -> (i32, i32) {
    %c0_i32 = arith.constant 0 : i32
    %c0_i32_0 = arith.constant 0 : i32
    return %arg0, %c0_i32 : i32, i32
  }
}

</mosaic_0001>

<bundles_post_ra>
// kernel: tpu_custom_call.1
= control target key start
LH: loop header
LB: loop body
LE: loop exit
PB: predicated region body
PF: predicated region fallthrough
CT: control target
= control target key end

     0   :  { %v2933_v1 = vmov 0   ;;  %vm438_vm0 = vsmask.f32 7424  ;;  %vm951_vm1 = vcmask 1046528   ;;  %s4243_s0 = inlined_call_operand.vmem [shape: bf16[32,18,128], index: 0, kind: input, shape index: {}]   ;;  %s4244_s1 = inlined_call_operand.vmem [shape: bf16[384,128], index: 1, kind: input, shape index: {}]   ;;  %s4245_s2 = inlined_call_operand.vmem [shape: f32[1,128], index: 2, kind: input, shape index: {}]   ;;  %s4246_s3 = inlined_call_operand.vmem [shape: f32[128,128], index: 3, kind: input, shape index: {}]   ;;  %s4247_s4 = inlined_call_operand.vmem [shape: f32[1,128], index: 4, kind: input, shape index: {}]   ;;  %s4248_s5 = inlined_call_operand.hbm [shape: f32[32,128], index: 5, kind: output, shape index: {}]  }
   0x1   :  { %v2781_v0 = vld [vmem:[%s4244_s1] sm:$0xff]   ;;  %1279 = vmatprep.subr.bf16.mxu0 %v2933_v1  ;;  %2745 = vmatprep.subr.bf16.mxu1 %v2933_v1  ;;  %v2782_v2 = vld [vmem:[%s4244_s1 + $0x8] sm:$0xff]   ;;  %v2783_v3 = vld [vmem:[%s4244_s1 + $0x10] sm:$0xff]  }
   0x2   :  { %1280 = vmatpush1.bf16.msra.mxu0 %v2781_v0  ;;  %2761 = vmatpush1.bf16.msra.mxu1 %v2781_v0  ;;  %v2784_v4 = vld [vmem:[%s4244_s1 + $0x18] sm:$0xff]   ;;  %v2785_v5 = vld [vmem:[%s4244_s1 + $0x20] sm:$0xff]   ;;  %v2786_v8 = vld [vmem:[%s4244_s1 + $0x28] sm:$0xff]  }
   0x3   :  { %1281 = vmatprep.subr.bf16.mxu0 %v2933_v1  ;;  %2746 = vmatprep.subr.bf16.mxu1 %v2933_v1  ;;  %v22_v6 = vld [vmem:[%s4243_s0] sm:$0xf]  ;;  %v2998_v7 = vld [vmem:[%s4243_s0 + $0x4] sm:$0xf]  ;;  %v72_v11 = vld [vmem:[%s4243_s0 + $0x12c] sm:$0xf] }
   0x4   :  { %v3004_v9 = vcombine.low %v22_v6, %v2998_v7  ;;  %v3009_v10 = vld [vmem:[%s4243_s0 + $0x8] ss:$0 sps:$4 sm:$0x11]   ;;  %v73_v12 = vld [vmem:[%s4243_s0 + $0x130] sm:$0xf]  ;;  %v2788_v29 = vld [vmem:[%s4244_s1 + $0x38] sm:$0xff]  }
   0x5   :  { %v447_v15 = vshll.u32 %v3009_v10, 16  ;;  %v3022_v16 = vcombine.low %v72_v11, %v73_v12  ;;  %v2800_v17 = vld [vmem:[%s4243_s0 + $0x134] ss:$0 sps:$4 sm:$0x11]   ;;  %v2789_v31 = vld [vmem:[%s4244_s1 + $0x40] sm:$0xff]   ;;  %v2790_v32 = vld [vmem:[%s4244_s1 + $0x48] sm:$0xff]  }
   0x6   :  { %1282 = vmatpush1.bf16.msra.mxu0 %v2782_v2  ;;  %2762 = vmatpush1.bf16.msra.mxu1 %v2782_v2  ;;  %v440_v13 = vshrl.u32 %v3004_v9, 16  ;;  %v442_v14 = vshll.u32 %v3004_v9, 16  ;;  %v2787_v22 = vld [vmem:[%s4244_s1 + $0x30] sm:$0xff]   ;;  %v747_v23 = vshll.u32 %v2800_v17, 16  ;;  %v2792_v34 = vld [vmem:[%s4244_s1 + $0x58] sm:$0xff]   ;;  %v2793_v39 = vld [vmem:[%s4244_s1 + $0x60] sm:$0xff]  }
   0x7   :  { %1283 = vmatprep.subr.bf16.mxu0 %v2933_v1  ;;  %2747 = vmatprep.subr.bf16.mxu1 %v2933_v1  ;;  %v449_v19 = vrot.slane %v447_v15, 1  ;;  %v740_v20 = vshrl.u32 %v3022_v16, 16  ;;  %v742_v21 = vshll.u32 %v3022_v16, 16  ;;  %v2791_v33 = vld [vmem:[%s4244_s1 + $0x50] sm:$0xff]   ;;  %v24_v35 = vld [vmem:[%s4243_s0 + $0xc] sm:$0xf] }
   0x8   :  { %v444_v18 = vrot.slane %v442_v14, 1  ;;  %v749_v26 = vrot.slane %v747_v23, 1  ;;  %v3065_v36 = vld [vmem:[%s4243_s0 + $0x10] sm:$0xf]  ;;  %v74_v37 = vld [vmem:[%s4243_s0 + $0x138] sm:$0xf] }
   0x9   :  { %v744_v25 = vrot.slane %v742_v21, 1  ;;  %v75_v38 = vld [vmem:[%s4243_s0 + $0x13c] sm:$0xf]  ;;  %v3079_v40 = vcombine.low %v24_v35, %v3065_v36  ;;  %v3088_v42 = vld [vmem:[%s4243_s0 + $0x14] ss:$0 sps:$4 sm:$0x11]  }
   0xa   :  { %1284 = vmatpush1.bf16.msra.mxu0 %v2783_v3  ;;  %2763 = vmatpush1.bf16.msra.mxu1 %v2783_v3  ;;  %v445_v24 = vor.u32 %v444_v18, %v440_v13  ;;  %v3081_v41 = vcombine.low %v74_v37, %v75_v38  ;;  %v2794_v43 = vld [vmem:[%s4244_s1 + $0x68] sm:$0xff]   ;;  %v2804_v44 = vld [vmem:[%s4243_s0 + $0x140] ss:$0 sps:$4 sm:$0x11]   ;;  %v26_v45 = vld [vmem:[%s4243_s0 + $0x18] sm:$0xf] }
   0xb   :  { %1285 = vmatprep.subr.bf16.mxu0 %v2933_v1  ;;  %2748 = vmatprep.subr.bf16.mxu1 %v2933_v1  ;;  %v745_v28 = vor.u32 %v744_v25, %v740_v20  ;;  %v454_v46 = vshll.u32 %v3079_v40, 16  ;;  %v3104_v48 = vld [vmem:[%s4243_s0 + $0x1c] sm:$0xf]  ;;  %v76_v49 = vld [vmem:[%s4243_s0 + $0x144] sm:$0xf]  ;;  %v459_v51 = vshll.u32 %v3088_v42, 16 }
   0xc   :  { %v450_v27 = vsel %vm438_vm0, %v445_v24, %v449_v19  ;;  %v754_v47 = vshll.u32 %v3081_v41, 16  ;;  %v77_v50 = vld [vmem:[%s4243_s0 + $0x148] sm:$0xf]  ;;  %v452_v52 = vshrl.u32 %v3079_v40, 16  ;;  %v752_v53 = vshrl.u32 %v3081_v41, 16  ;;  %v2795_v55 = vld [vmem:[%s4244_s1 + $0x70] sm:$0xff]  }
   0xd   :  { %v750_v30 = vsel %vm438_vm0, %v745_v28, %v749_v26  ;;  %1311 = vmatprep.mubr.bf16.mxu0 %v450_v27  ;;  %v759_v54 = vshll.u32 %v2804_v44, 16  ;;  %v456_v56 = vrot.slane %v454_v46, 1  ;;  %v3121_v58 = vcombine.low %v26_v45, %v3104_v48  ;;  %v2796_v60 = vld [vmem:[%s4244_s1 + $0x78] sm:$0xff]   ;;  %v3133_v62 = vld [vmem:[%s4243_s0 + $0x20] ss:$0 sps:$4 sm:$0x11]  }
   0xe   :  { %1286 = vmatpush1.bf16.msra.mxu0 %v2784_v4  ;;  %2764 = vmatpush1.bf16.msra.mxu1 %v2784_v4  ;;  %v756_v57 = vrot.slane %v754_v47, 1  ;;  %v3123_v59 = vcombine.low %v76_v49, %v77_v50  ;;  %v461_v61 = vrot.slane %v459_v51, 1  ;;  %v2808_v0 = vld [vmem:[%s4243_s0 + $0x14c] ss:$0 sps:$4 sm:$0x11]   ;;  %v2809_v2 = vld [vmem:[%s4244_s1 + $0x80] sm:$0xff]  }
   0xf   :  { %1287 = vmatprep.subr.bf16.mxu0 %v2933_v1  ;;  %2749 = vmatprep.subr.bf16.mxu1 %v2933_v1  ;;  %v761_v63 = vrot.slane %v759_v54, 1  ;;  %v28_v3 = vld [vmem:[%s4243_s0 + $0x24] sm:$0xf]  ;;  %v457_v4 = vor.u32 %v456_v56, %v452_v52  ;;  %v78_v12 = vld [vmem:[%s4243_s0 + $0x150] sm:$0xf]  ;;  %v464_v15 = vshrl.u32 %v3121_v58, 16 }
  0x10   :  { %1511 = vmatprep.mubr.bf16.mxu1 %v750_v30  ;;  %v766_v6 = vshll.u32 %v3123_v59, 16  ;;  %v757_v11 = vor.u32 %v756_v57, %v752_v53  ;;  %v79_v13 = vld [vmem:[%s4243_s0 + $0x154] sm:$0xf]  ;;  %v118_v14 = vld [vmem:[%s4243_s0] sm:$0xe]  ;;  %v471_v17 = vshll.u32 %v3133_v62, 16 }
  0x11   :  { %v2477_v18 = vcombine.low %v118_v14, %v2998_v7  ;;  %v953_v19 = vrot.slane %v3009_v10, 1  ;;  %v462_v20 = vsel %vm438_vm0, %v457_v4, %v461_v61  ;;  %v3170_v23 = vcombine.low %v78_v12, %v79_v13  ;;  %v3177_v7 = vld [vmem:[%s4243_s0 + $0x2c] ss:$0 sps:$4 sm:$0x11]   ;;  %v3200_v35 = vld [vmem:[%s4243_s0 + $0x34] sm:$0xf] }
  0x12   :  { %1288 = vmatpush1.bf16.msra.mxu0 %v2785_v5  ;;  %2765 = vmatpush1.bf16.msra.mxu1 %v2785_v5  ;;  %v466_v5 = vshll.u32 %v3121_v58, 16  ;;  %v762_v24 = vsel %vm438_vm0, %v757_v11, %v761_v63  ;;  %v764_v25 = vshrl.u32 %v3123_v59, 16  ;;  %v768_v26 = vrot.slane %v766_v6, 1  ;;  %v2814_v10 = vld [vmem:[%s4244_s1 + $0x88] sm:$0xff]   ;;  %v80_v37 = vld [vmem:[%s4243_s0 + $0x15c] sm:$0xf] }
  0x13   :  { %1289 = vmatprep.subr.bf16.mxu0 %v2933_v1  ;;  %2750 = vmatprep.subr.bf16.mxu1 %v2933_v1  ;;  %v952_v27 = vrot.slane %v2477_v18, 1  ;;  %v3208_v38 = vld [vmem:[%s4243_s0 + $0x160] sm:$0xf]  ;;  %v483_v45 = vshll.u32 %v3177_v7, 16  ;;  %v776_v52 = vshrl.u32 %v3170_v23, 16 }
  0x14   :  { %v468_v21 = vrot.slane %v466_v5, 1  ;;  %v3220_v49 = vcombine.low %v80_v37, %v3208_v38  ;;  %v3228_v54 = vld [vmem:[%s4243_s0 + $0x38] ss:$0 sps:$4 sm:$0x11]   ;;  %v3256_v4 = vld [vmem:[%s4243_s0 + $0x16c] sm:$0xf] }
  0x15   :  { %v3191_v30 = vsel %vm951_vm1, %v952_v27, %v953_v19  ;;  %v485_v57 = vrot.slane %v483_v45, 1  ;;  %v3238_v61 = vld [vmem:[%s4243_s0 + $0x164] ss:$0 sps:$4 sm:$0x11]   ;;  %v495_v13 = vshll.u32 %v3228_v54, 16 }
  0x16   :  { %1290 = vmatpush1.bf16.msra.mxu0 %v2786_v8  ;;  %2766 = vmatpush1.bf16.msra.mxu1 %v2786_v8  ;;  %v3149_v8 = vld [vmem:[%s4243_s0 + $0x28] sm:$0xf]  ;;  %v2825_v5 = vld [vmem:[%s4244_s1 + $0xa0] sm:$0xff]   ;;  %v795_v14 = vshll.u32 %v3238_v61, 16  ;;  %v788_v19 = vshrl.u32 %v3220_v49, 16 }
  0x17   :  { %1291 = vmatprep.subr.bf16.mxu0 %v2933_v1  ;;  %2751 = vmatprep.subr.bf16.mxu1 %v2933_v1 }
  0x18   :  { %v797_v27 = vrot.slane %v795_v14, 1 }
  0x1a   :  { %1292 = vmatpush1.bf16.msra.mxu0 %v2787_v22  ;;  %2767 = vmatpush1.bf16.msra.mxu1 %v2787_v22  ;;  %v771_v22 = vshll.u32 %v2808_v0, 16  ;;  %v790_v0 = vshll.u32 %v3220_v49, 16 }
  0x1b   :  { %1293 = vmatprep.subr.bf16.mxu0 %v2933_v1  ;;  %2752 = vmatprep.subr.bf16.mxu1 %v2933_v1 }
  0x1e   :  { %1294 = vmatpush1.bf16.msra.mxu0 %v2788_v29  ;;  %2768 = vmatpush1.bf16.msra.mxu1 %v2788_v29  ;;  %v3188_v29 = vld [vmem:[%s4243_s0 + $0x158] ss:$0 sps:$4 sm:$0x11]  }
  0x1f   :  { %1295 = vmatprep.subr.bf16.mxu0 %v2933_v1  ;;  %2753 = vmatprep.subr.bf16.mxu1 %v2933_v1  ;;  %v783_v46 = vshll.u32 %v3188_v29, 16 }
  0x22   :  { %1296 = vmatpush1.bf16.msra.mxu0 %v2789_v31  ;;  %2769 = vmatpush1.bf16.msra.mxu1 %v2789_v31  ;;  %v473_v31 = vrot.slane %v471_v17, 1 }
  0x23   :  { %1297 = vmatprep.subr.bf16.mxu0 %v2933_v1  ;;  %2754 = vmatprep.subr.bf16.mxu1 %v2933_v1 }
  0x26   :  { %1298 = vmatpush1.bf16.msra.mxu0 %v2790_v32  ;;  %2770 = vmatpush1.bf16.msra.mxu1 %v2790_v32  ;;  %v773_v32 = vrot.slane %v771_v22, 1  ;;  %v2826_v22 = vld [vmem:[%s4244_s1 + $0xa8] sm:$0xff]  }
  0x27   :  { %1299 = vmatprep.subr.bf16.mxu0 %v2933_v1  ;;  %2755 = vmatprep.subr.bf16.mxu1 %v2933_v1 }
  0x2a   :  { %1300 = vmatpush1.bf16.msra.mxu0 %v2791_v33  ;;  %2771 = vmatpush1.bf16.msra.mxu1 %v2791_v33  ;;  %v778_v33 = vshll.u32 %v3170_v23, 16 }
  0x2b   :  { %1301 = vmatprep.subr.bf16.mxu0 %v2933_v1  ;;  %2756 = vmatprep.subr.bf16.mxu1 %v2933_v1 }
  0x2c   :  { %v780_v53 = vrot.slane %v778_v33, 1  ;;  %v3304_v33 = vld [vmem:[%s4243_s0 + $0x178] sm:$0xf] }
  0x2e   :  { %1302 = vmatpush1.bf16.msra.mxu0 %v2792_v34  ;;  %2772 = vmatpush1.bf16.msra.mxu1 %v2792_v34  ;;  %v769_v34 = vor.u32 %v768_v26, %v764_v25  ;;  %v3287_v25 = vld [vmem:[%s4243_s0 + $0x170] ss:$0 sps:$4 sm:$0x11]   ;;  %v497_v26 = vrot.slane %v495_v13, 1 }
  0x2f   :  { %1303 = vmatprep.subr.bf16.mxu0 %v2933_v1  ;;  %2757 = vmatprep.subr.bf16.mxu1 %v2933_v1 }
  0x30   :  { %v774_v51 = vsel %vm438_vm0, %v769_v34, %v773_v32  ;;  %v84_v32 = vld [vmem:[%s4243_s0 + $0x174] sm:$0xf] }
  0x32   :  { %1304 = vmatpush1.bf16.msra.mxu0 %v2793_v39  ;;  %2773 = vmatpush1.bf16.msra.mxu1 %v2793_v39  ;;  %v2819_v39 = vld [vmem:[%s4244_s1 + $0x90] sm:$0xff]  }
  0x33   :  { %1305 = vmatprep.subr.bf16.mxu0 %v2933_v1  ;;  %2758 = vmatprep.subr.bf16.mxu1 %v2933_v1 }
  0x36   :  { %1306 = vmatpush1.bf16.msra.mxu0 %v2794_v43  ;;  %2774 = vmatpush1.bf16.msra.mxu1 %v2794_v43 }
  0x37   :  { %1307 = vmatprep.subr.bf16.mxu0 %v2933_v1  ;;  %2759 = vmatprep.subr.bf16.mxu1 %v2933_v1 }
  0x3a   :  { %1308 = vmatpush1.bf16.msra.mxu0 %v2795_v55  ;;  %2775 = vmatpush1.bf16.msra.mxu1 %v2795_v55  ;;  %v2820_v55 = vld [vmem:[%s4244_s1 + $0x98] sm:$0xff]  }
  0x3b   :  { %1309 = vmatprep.subr.bf16.mxu0 %v2933_v1  ;;  %2760 = vmatprep.subr.bf16.mxu1 %v2933_v1  ;;  %v3165_v1 = vcombine.low %v28_v3, %v3149_v8  ;;  %v82_v3 = vld [vmem:[%s4243_s0 + $0x168] sm:$0xf] }
  0x3d   :  { %v478_v28 = vshll.u32 %v3165_v1, 16  ;;  %v476_v43 = vshrl.u32 %v3165_v1, 16 }
  0x3e   :  { %1310 = vmatpush1.bf16.msra.mxu0 %v2796_v60  ;;  %2776 = vmatpush1.bf16.msra.mxu1 %v2796_v60  ;;  %v785_v60 = vrot.slane %v783_v46, 1 }
  0x3f   :  { %2595 = vmatprep.subr.bf16.mxu1 %v2809_v2  ;;  %v480_v44 = vrot.slane %v478_v28, 1 }
  0x41   :  { %1312 = vmatmul.mubr.bf16.vlgmr.msra.gmra.mrb[0].mxu0 %v3004_v9  ;;  %1512 = vmatmul.mubr.bf16.vlgmr.msra.gmra.mrb[0].mxu1 %v3022_v16  ;;  %v30_v9 = vld [vmem:[%s4243_s0 + $0x30] sm:$0xf]  ;;  %v469_v16 = vor.u32 %v468_v21, %v464_v15  ;;  %v481_v56 = vor.u32 %v480_v44, %v476_v43  ;;  %v3269_v15 = vcombine.low %v82_v3, %v3256_v4  ;;  %v3276_v21 = vld [vmem:[%s4243_s0 + $0x44] ss:$0 sps:$4 sm:$0x11]  }
  0x42   :  { %1319 = vmatprep.mubr.bf16.mxu0 %v462_v20  ;;  %1519 = vmatprep.mubr.bf16.mxu1 %v762_v24  ;;  %v3217_v47 = vcombine.low %v30_v9, %v3200_v35  ;;  %v792_v20 = vrot.slane %v790_v0, 1  ;;  %v2831_v9 = vld [vmem:[%s4244_s1 + $0xb0] sm:$0xff]   ;;  %v507_v37 = vshll.u32 %v3276_v21, 16  ;;  %v3335_v0 = vld [vmem:[%s4243_s0 + $0x17c] ss:$0 sps:$4 sm:$0x11]  }
  0x43   :  { %2596 = vmatpush3.bf16.msra.mxu1 %v2809_v2  ;;  %v474_v50 = vsel %vm438_vm0, %v469_v16, %v473_v31  ;;  %v781_v2 = vor.u32 %v780_v53, %v776_v52  ;;  %v486_v6 = vsel %vm438_vm0, %v481_v56, %v485_v57  ;;  %v800_v43 = vshrl.u32 %v3269_v15, 16  ;;  %v2832_v52 = vld [vmem:[%s4244_s1 + $0xb8] sm:$0xff]  }
  0x44   :  { %2597 = vmatprep.subr.bf16.mxu1 %v2814_v10  ;;  %v490_v63 = vshll.u32 %v3217_v47, 16  ;;  %v488_v12 = vshrl.u32 %v3217_v47, 16  ;;  %v793_v31 = vor.u32 %v792_v20, %v788_v19 }
  0x45   :  { %v786_v17 = vsel %vm438_vm0, %v781_v2, %v785_v60  ;;  %v3329_v60 = vld [vmem:[%s4243_s0 + $0x50] ss:$0 sps:$4 sm:$0x11]  }
  0x46   :  { %v492_v18 = vrot.slane %v490_v63, 1 }
  0x47   :  { %2598 = vmatpush3.bf16.msra.mxu1 %v2814_v10  ;;  %v802_v10 = vshll.u32 %v3269_v15, 16 }
  0x48   :  { %2599 = vmatprep.subr.bf16.mxu1 %v2819_v39  ;;  %v493_v28 = vor.u32 %v492_v18, %v488_v12  ;;  %v519_v12 = vshll.u32 %v3329_v60, 16 }
  0x49   :  { %1320 = vmatmul.mubr.bf16.gmra.mrb[4].mxu0 %v3079_v40  ;;  %1520 = vmatmul.mubr.bf16.gmra.mrb[4].mxu1 %v3081_v41  ;;  %v32_v40 = vld [vmem:[%s4243_s0 + $0x3c] sm:$0xf]  ;;  %v3248_v41 = vld [vmem:[%s4243_s0 + $0x40] sm:$0xf]  ;;  %v804_v44 = vrot.slane %v802_v10, 1 }
  0x4a   :  { %1327 = vmatprep.mubr.bf16.mxu0 %v474_v50  ;;  %1527 = vmatprep.mubr.bf16.mxu1 %v774_v51  ;;  %v3263_v11 = vcombine.low %v32_v40, %v3248_v41  ;;  %v498_v46 = vsel %vm438_vm0, %v493_v28, %v497_v26  ;;  %v798_v50 = vsel %vm438_vm0, %v793_v31, %v797_v27  ;;  %v3344_v40 = vld [vmem:[%s4243_s0 + $0x58] sm:$0xf]  ;;  %v521_v20 = vrot.slane %v519_v12, 1  ;;  %v38_v10 = vld [vmem:[%s4243_s0 + $0x60] sm:$0xf] }
  0x4b   :  { %2600 = vmatpush3.bf16.msra.mxu1 %v2819_v39  ;;  %v807_v39 = vshll.u32 %v3287_v25, 16  ;;  %v3319_v51 = vcombine.low %v84_v32, %v3304_v33  ;;  %v805_v57 = vor.u32 %v804_v44, %v800_v43  ;;  %v3389_v43 = vld [vmem:[%s4243_s0 + $0x68] ss:$0 sps:$4 sm:$0x11]   ;;  %v3398_v44 = vld [vmem:[%s4243_s0 + $0x70] sm:$0xf] }
  0x4c   :  { %2601 = vmatprep.subr.bf16.mxu1 %v2820_v55  ;;  %v502_v24 = vshll.u32 %v3263_v11, 16  ;;  %v500_v16 = vshrl.u32 %v3263_v11, 16 }
  0x4d   :  { %v809_v56 = vrot.slane %v807_v39, 1  ;;  %v812_v13 = vshrl.u32 %v3319_v51, 16 }
  0x4e   :  { %v504_v34 = vrot.slane %v502_v24, 1 }
  0x4f   :  { %2602 = vmatpush3.bf16.msra.mxu1 %v2820_v55  ;;  %v509_v55 = vrot.slane %v507_v37, 1  ;;  %v810_v3 = vsel %vm438_vm0, %v805_v57, %v809_v56  ;;  %v120_v37 = vld [vmem:[%s4243_s0 + $0x18] sm:$0xe]  ;;  %v543_v56 = vshll.u32 %v3389_v43, 16 }
  0x50   :  { %2603 = vmatprep.subr.bf16.mxu1 %v2825_v5  ;;  %v505_v53 = vor.u32 %v504_v34, %v500_v16  ;;  %v119_v34 = vld [vmem:[%s4243_s0 + $0xc] sm:$0xe] }
  0x51   :  { %1328 = vmatmul.mubr.bf16.gmra.mrb[8].mxu0 %v3121_v58  ;;  %1528 = vmatmul.mubr.bf16.gmra.mrb[8].mxu1 %v3123_v59  ;;  %v34_v58 = vld [vmem:[%s4243_s0 + $0x48] sm:$0xf]  ;;  %v3296_v59 = vld [vmem:[%s4243_s0 + $0x4c] sm:$0xf] }
  0x52   :  { %1335 = vmatprep.mubr.bf16.mxu0 %v486_v6  ;;  %1535 = vmatprep.mubr.bf16.mxu1 %v786_v17  ;;  %v3314_v45 = vcombine.low %v34_v58, %v3296_v59  ;;  %v510_v2 = vsel %vm438_vm0, %v505_v53, %v509_v55  ;;  %v819_v17 = vshll.u32 %v3335_v0, 16 }
  0x53   :  { %2604 = vmatpush3.bf16.msra.mxu1 %v2825_v5 }
  0x54   :  { %2605 = vmatprep.subr.bf16.mxu1 %v2826_v22  ;;  %v514_v63 = vshll.u32 %v3314_v45, 16  ;;  %v512_v5 = vshrl.u32 %v3314_v45, 16  ;;  %v821_v26 = vrot.slane %v819_v17, 1 }
  0x56   :  { %v516_v6 = vrot.slane %v514_v63, 1 }
  0x57   :  { %2606 = vmatpush3.bf16.msra.mxu1 %v2826_v22  ;;  %v3360_v22 = vld [vmem:[%s4243_s0 + $0x5c] ss:$0 sps:$4 sm:$0x11]  }
  0x58   :  { %2607 = vmatprep.subr.bf16.mxu1 %v2831_v9  ;;  %v517_v19 = vor.u32 %v516_v6, %v512_v5  ;;  %v531_v28 = vshll.u32 %v3360_v22, 16 }
  0x59   :  { %1336 = vmatmul.mubr.bf16.gmra.mrb[12].mxu0 %v3165_v1  ;;  %1536 = vmatmul.mubr.bf16.gmra.mrb[12].mxu1 %v3170_v23  ;;  %v814_v1 = vshll.u32 %v3319_v51, 16  ;;  %v36_v23 = vld [vmem:[%s4243_s0 + $0x54] sm:$0xf] }
  0x5a   :  { %1343 = vmatprep.mubr.bf16.mxu0 %v498_v46  ;;  %1543 = vmatprep.mubr.bf16.mxu1 %v798_v50  ;;  %v3353_v18 = vcombine.low %v36_v23, %v3344_v40  ;;  %v533_v16 = vrot.slane %v531_v28, 1  ;;  %v2478_v46 = vcombine.low %v119_v34, %v3065_v36  ;;  %v3416_v23 = vld [vmem:[%s4243_s0 + $0x74] ss:$0 sps:$4 sm:$0x11]  }
  0x5b   :  { %2608 = vmatpush3.bf16.msra.mxu1 %v2831_v9  ;;  %v816_v14 = vrot.slane %v814_v1, 1  ;;  %v956_v1 = vrot.slane %v3088_v42, 1  ;;  %v122_v42 = vld [vmem:[%s4243_s0 + $0x30] sm:$0xe] }
  0x5c   :  { %2609 = vmatprep.subr.bf16.mxu1 %v2832_v52  ;;  %v526_v27 = vshll.u32 %v3353_v18, 16  ;;  %v524_v58 = vshrl.u32 %v3353_v18, 16  ;;  %v955_v63 = vrot.slane %v2478_v46, 1 }
  0x5d   :  { %v817_v24 = vor.u32 %v816_v14, %v812_v13  ;;  %v555_v13 = vshll.u32 %v3416_v23, 16  ;;  %v2481_v14 = vcombine.low %v122_v42, %v3200_v35 }
  0x5e   :  { %v528_v32 = vrot.slane %v526_v27, 1  ;;  %v957_v5 = vsel %vm951_vm1, %v955_v63, %v956_v1 }
  0x5f   :  { %2610 = vmatpush3.bf16.msra.mxu1 %v2832_v52  ;;  %v822_v31 = vsel %vm438_vm0, %v817_v24, %v821_v26  ;;  %v2479_v52 = vcombine.low %v120_v37, %v3104_v48  ;;  %v959_v48 = vrot.slane %v3133_v62, 1  ;;  %v42_v62 = vld [vmem:[%s4243_s0 + $0x78] sm:$0xf] }
  0x60   :  { %v529_v39 = vor.u32 %v528_v32, %v524_v58 }
  0x61   :  { %1344 = vmatmul.mubr.bf16.gmra.mrb[16].mxu0 %v3217_v47  ;;  %1544 = vmatmul.mubr.bf16.gmra.mrb[16].mxu1 %v3220_v49  ;;  %v3369_v47 = vld [vmem:[%s4243_s0 + $0x64] sm:$0xf]  ;;  %v522_v49 = vsel %vm438_vm0, %v517_v19, %v521_v20  ;;  %v958_v36 = vrot.slane %v2479_v52, 1 }
  0x62   :  { %1351 = vmatprep.mubr.bf16.mxu0 %v510_v2  ;;  %1551 = vmatprep.mubr.bf16.mxu1 %v810_v3  ;;  %v3376_v9 = vcombine.low %v38_v10, %v3369_v47  ;;  %v534_v53 = vsel %vm438_vm0, %v529_v39, %v533_v16  ;;  %v545_v3 = vrot.slane %v543_v56, 1 }
  0x63   :  { %v960_v6 = vsel %vm951_vm1, %v958_v36, %v959_v48 }
  0x64   :  { %v536_v50 = vshrl.u32 %v3376_v9, 16 }
  0x69   :  { %1352 = vmatmul.mubr.bf16.gmra.mrb[20].mxu0 %v3263_v11  ;;  %1552 = vmatmul.mubr.bf16.gmra.mrb[20].mxu1 %v3269_v15  ;;  %v538_v11 = vshll.u32 %v3376_v9, 16  ;;  %v40_v15 = vld [vmem:[%s4243_s0 + $0x6c] sm:$0xf] }
  0x6a   :  { %1359 = vmatprep.mubr.bf16.mxu0 %v522_v49  ;;  %1559 = vmatprep.mubr.bf16.mxu1 %v822_v31  ;;  %v3406_v57 = vcombine.low %v40_v15, %v3398_v44 }
  0x6b   :  { %v540_v55 = vrot.slane %v538_v11, 1 }
  0x6d   :  { %v541_v2 = vor.u32 %v540_v55, %v536_v50 }
  0x71   :  { %1360 = vmatmul.mubr.bf16.gmra.mrb[24].mxu0 %v3314_v45  ;;  %1560 = vmatmul.mubr.bf16.gmra.mrb[24].mxu1 %v3319_v51  ;;  %v121_v45 = vld [vmem:[%s4243_s0 + $0x24] sm:$0xe]  ;;  %v550_v51 = vshll.u32 %v3406_v57, 16 }
  0x72   :  { %1367 = vmatprep.mubr.bf16.mxu0 %v534_v53  ;;  %2611 = vmatprep.mubr.bf16.mxu1 %v3191_v30  ;;  %v3431_v30 = vld [vmem:[%s4243_s0 + $0x7c] sm:$0xf]  ;;  %v2480_v12 = vcombine.low %v121_v45, %v3149_v8 }
  0x73   :  { %10 = vsyncpa [#allocation3], 0  ;;  %v546_v17 = vsel %vm438_vm0, %v541_v2, %v545_v3  ;;  %v548_v19 = vshrl.u32 %v3406_v57, 16  ;;  %v552_v20 = vrot.slane %v550_v51, 1  ;;  %v3441_v24 = vcombine.low %v42_v62, %v3431_v30  ;;  %v123_v10 = vld [vmem:[%s4243_s0 + $0x3c] sm:$0xe] }
  0x74   :  { %v962_v26 = vrot.slane %v3177_v7, 1  ;;  %v965_v8 = vrot.slane %v3228_v54, 1  ;;  %v961_v27 = vrot.slane %v2480_v12, 1  ;;  %v964_v35 = vrot.slane %v2481_v14, 1  ;;  %v124_v49 = vld [vmem:[%s4243_s0 + $0x48] sm:$0xe] }
  0x75   :  { %v553_v28 = vor.u32 %v552_v20, %v548_v19  ;;  %v557_v31 = vrot.slane %v555_v13, 1  ;;  %v3455_v7 = vld [vmem:[%s4243_s0 + $0x80] ss:$0 sps:$4 sm:$0x11]   ;;  %v562_v54 = vshll.u32 %v3441_v24, 16  ;;  %v2482_v32 = vcombine.low %v123_v10, %v3248_v41  ;;  %s2934_s11 = smov [#allocation2]  }
  0x76   :  { %v3464_v58 = vld [vmem:[%s4243_s0 + $0x88] sm:$0xf]  ;;  %v963_v16 = vsel %vm951_vm1, %v961_v27, %v962_v26  ;;  %v966_v34 = vsel %vm951_vm1, %v964_v35, %v965_v8  ;;  %v560_v37 = vshrl.u32 %v3441_v24, 16  ;;  %v2483_v39 = vcombine.low %v124_v49, %v3296_v59  ;;  %v125_v59 = vld [vmem:[%s4243_s0 + $0x54] sm:$0xe]  ;;  %s2402_s12 = sshll.u32 %s2934_s11, 4  ;;  %s2403_s12 = int_to_ptr.vmem [resolvable:$true] %s2402_s12 }
  0x77   :  { %v558_v11 = vsel %vm438_vm0, %v553_v28, %v557_v31  ;;  %v564_v15 = vrot.slane %v562_v54, 1  ;;  %v567_v46 = vshll.u32 %v3455_v7, 16  ;;  %v967_v41 = vrot.slane %v2482_v32, 1  ;;  %v3485_v56 = vld [vmem:[%s4243_s0 + $0x8c] ss:$0 sps:$4 sm:$0x11]   ;;  %p2914_p1 = scmp.lt.s32.totalorder %s2403_s12, %s2403_s12 }
  0x78   :  { %v968_v52 = vrot.slane %v3276_v21, 1  ;;  %v971_v53 = vrot.slane %v3329_v60, 1  ;;  %v970_v55 = vrot.slane %v2483_v39, 1  ;;  %v126_v21 = vld [vmem:[%s4243_s0 + $0x60] sm:$0xe]  ;;  %v2484_v48 = vcombine.low %v125_v59, %v3344_v40  ;;  %s2909_s13 = scalar_lea.vmem %s2403_s12, 512 }
  0x79   :  { %1368 = vmatmul.mubr.bf16.gmra.mrb[28].mxu0 %v3353_v18  ;;  %2612 = vmatmul.mubr.bf16.vlgmr.msra.gmra.mrb[28].mxu1 %v957_v5  ;;  %v44_v18 = vld [vmem:[%s4243_s0 + $0x84] sm:$0xf]  ;;  %v565_v63 = vor.u32 %v564_v15, %v560_v37  ;;  %v46_v60 = vld [vmem:[%s4243_s0 + $0x90] sm:$0xf]  ;;  %v3497_v36 = vld [vmem:[%s4243_s0 + $0x94] sm:$0xf]  ;;  %v2485_v51 = vcombine.low %v126_v21, %v3369_v47  ;;  %p2910_p0 = scmp.ne.s32.totalorder %s2403_s12, %s2909_s13  ;;  %p2915_p2 = scmp.lt.s32.totalorder %s2909_s13, %s2909_s13 }
  0x7a   :  { %1375 = vmatprep.mubr.bf16.mxu0 %v546_v17  ;;  %2615 = vmatprep.mubr.bf16.mxu1 %v960_v6  ;;  %v3474_v50 = vcombine.low %v44_v18, %v3464_v58  ;;  %v969_v2 = vsel %vm951_vm1, %v967_v41, %v968_v52  ;;  %v972_v3 = vsel %vm951_vm1, %v970_v55, %v971_v53  ;;  %v579_v45 = vshll.u32 %v3485_v56, 16  ;;  %v2854_v47 = vld [vmem:[%s4243_s0 + $0x98] ss:$0 sps:$4 sm:$0x11]   ;;  %v127_v20 = vld [vmem:[%s4243_s0 + $0x6c] sm:$0xe] }
  0x7b   :  { %v3507_v6 = vcombine.low %v46_v60, %v3497_v36  ;;  %v973_v40 = vrot.slane %v2484_v48, 1  ;;  %v974_v12 = vrot.slane %v3360_v22, 1  ;;  %v976_v13 = vrot.slane %v2485_v51, 1  ;;  %v128_v22 = vld [vmem:[%s4243_s0 + $0x78] sm:$0xe]  ;;  %p2916_p3 = por %p2915_p2, %p2914_p1 }
  0x7c   :  { %v574_v1 = vshll.u32 %v3474_v50, 16  ;;  %v572_v62 = vshrl.u32 %v3474_v50, 16  ;;  %v977_v14 = vrot.slane %v3389_v43, 1  ;;  %v581_v19 = vrot.slane %v579_v45, 1  ;;  %v48_v43 = vld [vmem:[%s4243_s0 + $0x9c] sm:$0xf] }
  0x7d   :  { %v3528_v26 = vld [vmem:[%s4243_s0 + $0xa0] sm:$0xf]  ;;  %v975_v8 = vsel %vm951_vm1, %v973_v40, %v974_v12  ;;  %v2486_v35 = vcombine.low %v127_v20, %v3398_v44  ;;  %v591_v10 = vshll.u32 %v2854_v47, 16  ;;  %v2487_v49 = vcombine.low %v128_v22, %v3431_v30  ;;  %v129_v44 = vld [vmem:[%s4243_s0 + $0x84] sm:$0xe]  ;;  %p2917_p4 = pnand %p2916_p3, %p2910_p0 }
  0x7e   :  { %v576_v5 = vrot.slane %v574_v1, 1  ;;  %v978_v27 = vsel %vm951_vm1, %v976_v13, %v977_v14  ;;  %v584_v31 = vshrl.u32 %v3507_v6, 16  ;;  %v3537_v18 = vcombine.low %v48_v43, %v3528_v26  ;;  %v2858_v37 = vld [vmem:[%s4243_s0 + $0xa4] ss:$0 sps:$4 sm:$0x11]  }
  0x7f   :  { %v980_v32 = vrot.slane %v3416_v23, 1  ;;  %v979_v30 = vrot.slane %v2486_v35, 1  ;;  %v130_v23 = vld [vmem:[%s4243_s0 + $0x90] sm:$0xe]  ;;  %v50_v15 = vld [vmem:[%s4243_s0 + $0xa8] sm:$0xf] }
  0x80   :  { %v577_v17 = vor.u32 %v576_v5, %v572_v62  ;;  %v603_v53 = vshll.u32 %v2858_v37, 16  ;;  %v2489_v55 = vcombine.low %v130_v23, %v3497_v36  ;;  %v989_v48 = vrot.slane %v2854_v47, 1  ;;  %v2862_v36 = vld [vmem:[%s4243_s0 + $0xb0] ss:$0 sps:$4 sm:$0x11]  }
  0x81   :  { %1376 = vmatmul.mubr.bf16.gmra.mrb[32].mxu0 %v3376_v9  ;;  %2616 = vmatmul.mubr.bf16.gmra.mrb[32].mxu1 %v963_v16  ;;  %v569_v9 = vrot.slane %v567_v46, 1  ;;  %v982_v16 = vrot.slane %v2487_v49, 1  ;;  %v2488_v46 = vcombine.low %v129_v44, %v3464_v58  ;;  %v981_v41 = vsel %vm951_vm1, %v979_v30, %v980_v32  ;;  %v131_v45 = vld [vmem:[%s4243_s0 + $0x9c] sm:$0xe]  ;;  %v52_v51 = vld [vmem:[%s4243_s0 + $0xb4] sm:$0xf] }
  0x82   :  { %1383 = vmatprep.mubr.bf16.mxu0 %v558_v11  ;;  %2619 = vmatprep.mubr.bf16.mxu1 %v966_v34  ;;  %v582_v28 = vsel %vm438_vm0, %v577_v17, %v581_v19  ;;  %v983_v34 = vrot.slane %v3455_v7, 1  ;;  %v593_v11 = vrot.slane %v591_v10, 1  ;;  %v51_v7 = vld [vmem:[%s4243_s0 + $0xac] sm:$0xf]  ;;  %v986_v58 = vrot.slane %v3485_v56, 1 }
  0x83   :  { %v570_v42 = vsel %vm438_vm0, %v565_v63, %v569_v9  ;;  %v596_v63 = vshrl.u32 %v3537_v18, 16  ;;  %v3564_v1 = vcombine.low %v50_v15, %v51_v7  ;;  %v985_v21 = vrot.slane %v2488_v46, 1  ;;  %v132_v56 = vld [vmem:[%s4243_s0 + $0xa8] sm:$0xe]  ;;  %v53_v13 = vld [vmem:[%s4243_s0 + $0xb8] sm:$0xf] }
  0x84   :  { %v984_v52 = vsel %vm951_vm1, %v982_v16, %v983_v34  ;;  %v988_v60 = vrot.slane %v2489_v55, 1  ;;  %v2490_v5 = vcombine.low %v131_v45, %v3528_v26  ;;  %v615_v40 = vshll.u32 %v2862_v36, 16  ;;  %v133_v26 = vld [vmem:[%s4243_s0 + $0xb4] sm:$0xe]  ;;  %v55_v49 = vld [vmem:[%s4243_s0 + $0xc4] sm:$0xf] }
  0x85   :  { %v2491_v12 = vcombine.low %v132_v56, %v51_v7  ;;  %v608_v47 = vshrl.u32 %v3564_v1, 16  ;;  %v3589_v19 = vcombine.low %v52_v51, %v53_v13  ;;  %v995_v43 = vrot.slane %v2862_v36, 1  ;;  %v2865_v35 = vld [vmem:[%s4243_s0 + $0xbc] ss:$0 sps:$4 sm:$0x11]  }
  0x86   :  { %v990_v62 = vsel %vm951_vm1, %v988_v60, %v989_v48  ;;  %v991_v20 = vrot.slane %v2490_v5, 1  ;;  %v627_v30 = vshll.u32 %v2865_v35, 16  ;;  %v998_v23 = vrot.slane %v2865_v35, 1  ;;  %v56_v7 = vld [vmem:[%s4243_s0 + $0xcc] sm:$0xf] }
  0x87   :  { %v994_v22 = vrot.slane %v2491_v12, 1  ;;  %v622_v10 = vshll.u32 %v3589_v19, 16  ;;  %v620_v44 = vshrl.u32 %v3589_v19, 16  ;;  %v57_v46 = vld [vmem:[%s4243_s0 + $0xd0] sm:$0xf]  ;;  %vm2269_vm3 = vcmask 1041409  }
  0x88   :  { %v629_v15 = vrot.slane %v627_v30, 1  ;;  %v58_v51 = vld [vmem:[%s4243_s0 + $0xd8] sm:$0xf]  ;;  %v65_v30 = vld [vmem:[%s4243_s0 + $0x100] sm:$0xf]  ;;  %vm2271_vm4 = vcmask 1042434  }
  0x89   :  { %1384 = vmatmul.mubr.bf16.gmra.mrb[36].mxu0 %v3406_v57  ;;  %2620 = vmatmul.mubr.bf16.gmra.mrb[36].mxu1 %v969_v2  ;;  %v586_v57 = vshll.u32 %v3507_v6, 16  ;;  %v996_v32 = vsel %vm951_vm1, %v994_v22, %v995_v43  ;;  %v624_v34 = vrot.slane %v622_v10, 1  ;;  %v3672_v43 = vld [vmem:[%s4243_s0 + $0xec] ss:$0 sps:$4 sm:$0x11]   ;;  %vm2273_vm5 = vcmask 1043459  }
  0x8a   :  { %1391 = vmatprep.mubr.bf16.mxu0 %v570_v42  ;;  %2623 = vmatprep.mubr.bf16.mxu1 %v972_v3  ;;  %v605_v3 = vrot.slane %v603_v53, 1  ;;  %v987_v42 = vsel %vm951_vm1, %v985_v21, %v986_v58  ;;  %v3635_v21 = vcombine.low %v56_v7, %v57_v46  ;;  %v2871_v58 = vld [vmem:[%s4243_s0 + $0xd4] ss:$0 sps:$4 sm:$0x11]   ;;  %vm2275_vm6 = vcmask 1044484  }
  0x8b   :  { %v588_v54 = vrot.slane %v586_v57, 1  ;;  %v992_v57 = vrot.slane %v2858_v37, 1  ;;  %vm2277_vm7 = vcmask 1045509   ;;  %vm2279_vm8 = vcmask 1046534  }
  0x8c   :  { %vm2281_vm9 = vcmask 1047559  }
  0x8d   :  { %v589_v39 = vor.u32 %v588_v54, %v584_v31  ;;  %v2492_v31 = vcombine.low %v133_v26, %v53_v13  ;;  %v993_v54 = vsel %vm951_vm1, %v991_v20, %v992_v57  ;;  %v138_v20 = vld [vmem:[%s4243_s0 + $0xf0] sm:$0xe] }
  0x8f   :  { %v594_v59 = vsel %vm438_vm0, %v589_v39, %v593_v11  ;;  %v2868_v39 = vld [vmem:[%s4243_s0 + $0xc8] ss:$0 sps:$4 sm:$0x11]  }
  0x90   :  { %v1001_v53 = vrot.slane %v2868_v39, 1  ;;  %v639_v36 = vshll.u32 %v2868_v39, 16 }
  0x91   :  { %1392 = vmatmul.mubr.bf16.gmra.mrb[40].mxu0 %v3441_v24  ;;  %2624 = vmatmul.mubr.bf16.gmra.mrb[40].mxu1 %v975_v8  ;;  %v598_v24 = vshll.u32 %v3537_v18, 16 }
  0x92   :  { %1399 = vmatprep.mubr.bf16.mxu0 %v582_v28  ;;  %2627 = vmatprep.mubr.bf16.mxu1 %v978_v27  ;;  %v617_v27 = vrot.slane %v615_v40, 1  ;;  %v134_v28 = vld [vmem:[%s4243_s0 + $0xc0] sm:$0xe]  ;;  %v641_v5 = vrot.slane %v639_v36, 1  ;;  %v61_v40 = vld [vmem:[%s4243_s0 + $0xe8] sm:$0xf] }
  0x93   :  { %v600_v9 = vrot.slane %v598_v24, 1  ;;  %v2493_v11 = vcombine.low %v134_v28, %v55_v49  ;;  %v997_v24 = vrot.slane %v2492_v31, 1  ;;  %v60_v31 = vld [vmem:[%s4243_s0 + $0xe4] sm:$0xf] }
  0x95   :  { %v601_v2 = vor.u32 %v600_v9, %v596_v63  ;;  %v136_v63 = vld [vmem:[%s4243_s0 + $0xd8] sm:$0xe]  ;;  %v999_v9 = vsel %vm951_vm1, %v997_v24, %v998_v23  ;;  %v3698_v24 = vld [vmem:[%s4243_s0 + $0x10c] sm:$0xf]  ;;  %v140_v23 = vld [vmem:[%s4243_s0 + $0x108] sm:$0xe] }
  0x97   :  { %v606_v14 = vsel %vm438_vm0, %v601_v2, %v605_v3 }
  0x99   :  { %1400 = vmatmul.mubr.bf16.gmra.mrb[44].mxu0 %v3474_v50  ;;  %2628 = vmatmul.mubr.bf16.gmra.mrb[44].mxu1 %v981_v41  ;;  %v610_v50 = vshll.u32 %v3564_v1, 16  ;;  %v625_v41 = vor.u32 %v624_v34, %v620_v44 }
  0x9a   :  { %1407 = vmatprep.mubr.bf16.mxu0 %v594_v59  ;;  %2631 = vmatprep.mubr.bf16.mxu1 %v984_v52  ;;  %v1000_v52 = vrot.slane %v2493_v11, 1  ;;  %v59_v59 = vld [vmem:[%s4243_s0 + $0xdc] sm:$0xf] }
  0x9b   :  { %v612_v17 = vrot.slane %v610_v50, 1  ;;  %v630_v2 = vsel %vm438_vm0, %v625_v41, %v629_v15  ;;  %v3646_v50 = vld [vmem:[%s4243_s0 + $0xe0] ss:$0 sps:$4 sm:$0x11]   ;;  %v2495_v56 = vcombine.low %v136_v63, %v59_v59  ;;  %v3666_v57 = vcombine.low %v58_v51, %v59_v59  ;;  %v3739_v51 = vld [vmem:[%s4243_s0 + $0x124] sm:$0xf] }
  0x9c   :  { %v1002_v3 = vsel %vm951_vm1, %v1000_v52, %v1001_v53  ;;  %v3703_v15 = vcombine.low %v60_v31, %v61_v40  ;;  %v663_v53 = vshll.u32 %v3646_v50, 16  ;;  %v3718_v63 = vld [vmem:[%s4243_s0 + $0x110] ss:$0 sps:$4 sm:$0x11]   ;;  %v144_v31 = vld [vmem:[%s4243_s0 + $0x138] sm:$0xe] }
  0x9d   :  { %v613_v8 = vor.u32 %v612_v17, %v608_v47  ;;  %v1006_v13 = vrot.slane %v2495_v56, 1  ;;  %v646_v47 = vshll.u32 %v3635_v21, 16  ;;  %v63_v17 = vld [vmem:[%s4243_s0 + $0xf4] sm:$0xf]  ;;  %v658_v11 = vshll.u32 %v3666_v57, 16 }
  0x9e   :  { %v2497_v28 = vcombine.low %v138_v20, %v63_v17  ;;  %v656_v52 = vshrl.u32 %v3666_v57, 16  ;;  %v665_v36 = vrot.slane %v663_v53, 1  ;;  %v141_v56 = vld [vmem:[%s4243_s0 + $0x114] sm:$0xe]  ;;  %v675_v20 = vshll.u32 %v3672_v43, 16 }
  0x9f   :  { %v618_v16 = vsel %vm438_vm0, %v613_v8, %v617_v27  ;;  %v644_v8 = vshrl.u32 %v3635_v21, 16  ;;  %v651_v27 = vshll.u32 %v2871_v58, 16  ;;  %v660_v59 = vrot.slane %v658_v11, 1  ;;  %v2903_v53 = vld [vmem:[%s4243_s0 + $0x134] ss:$0 sps:$4 sm:$0x11]  }
  0xa0   :  { %v1012_v34 = vrot.slane %v2497_v28, 1 }
  0xa1   :  { %1408 = vmatmul.mubr.bf16.gmra.mrb[48].mxu0 %v3507_v6  ;;  %2632 = vmatmul.mubr.bf16.gmra.mrb[48].mxu1 %v987_v42  ;;  %v54_v6 = vld [vmem:[%s4243_s0 + $0xc0] sm:$0xf]  ;;  %v653_v44 = vrot.slane %v651_v27, 1 }
  0xa2   :  { %1415 = vmatprep.mubr.bf16.mxu0 %v606_v14  ;;  %2635 = vmatprep.mubr.bf16.mxu1 %v990_v62  ;;  %v3612_v37 = vcombine.low %v54_v6, %v55_v49  ;;  %v1004_v62 = vrot.slane %v2871_v58, 1  ;;  %v1007_v14 = vrot.slane %v3646_v50, 1  ;;  %v648_v6 = vrot.slane %v646_v47, 1  ;;  %v3680_v49 = vld [vmem:[%s4243_s0 + $0xf8] ss:$0 sps:$4 sm:$0x11]  }
  0xa3   :  { %v1013_v39 = vrot.slane %v3680_v49, 1  ;;  %v62_v58 = vld [vmem:[%s4243_s0 + $0xf0] sm:$0xf]  ;;  %v1019_v50 = vrot.slane %v3718_v63, 1 }
  0xa4   :  { %v634_v55 = vshll.u32 %v3612_v37, 16  ;;  %v632_v48 = vshrl.u32 %v3612_v37, 16  ;;  %v1008_v10 = vsel %vm951_vm1, %v1006_v13, %v1007_v14  ;;  %v668_v13 = vshrl.u32 %v3703_v15, 16 }
  0xa6   :  { %v636_v45 = vrot.slane %v634_v55, 1  ;;  %v1014_v55 = vsel %vm951_vm1, %v1012_v34, %v1013_v39  ;;  %v2902_v39 = vld [vmem:[%s4243_s0 + $0x13c] sm:$0xf] }
  0xa8   :  { %v637_v12 = vor.u32 %v636_v45, %v632_v48 }
  0xa9   :  { %1416 = vmatmul.mubr.bf16.gmra.mrb[52].mxu0 %v3537_v18  ;;  %2636 = vmatmul.mubr.bf16.gmra.mrb[52].mxu1 %v993_v54  ;;  %v135_v18 = vld [vmem:[%s4243_s0 + $0xcc] sm:$0xe] }
  0xaa   :  { %1423 = vmatprep.mubr.bf16.mxu0 %v618_v16  ;;  %2639 = vmatprep.mubr.bf16.mxu1 %v996_v32  ;;  %v2494_v60 = vcombine.low %v135_v18, %v57_v46  ;;  %v642_v35 = vsel %vm438_vm0, %v637_v12, %v641_v5  ;;  %v1010_v32 = vrot.slane %v3672_v43, 1  ;;  %v649_v16 = vor.u32 %v648_v6, %v644_v8  ;;  %v3709_v46 = vld [vmem:[%s4243_s0 + $0x104] ss:$0 sps:$4 sm:$0x11]  }
  0xab   :  { %v1016_v48 = vrot.slane %v3709_v46, 1 }
  0xac   :  { %v1003_v42 = vrot.slane %v2494_v60, 1  ;;  %v654_v18 = vsel %vm438_vm0, %v649_v16, %v653_v44  ;;  %v2901_v44 = vld [vmem:[%s4243_s0 + $0x130] sm:$0xf] }
  0xae   :  { %v1005_v22 = vsel %vm951_vm1, %v1003_v42, %v1004_v62  ;;  %v142_v42 = vld [vmem:[%s4243_s0 + $0x120] sm:$0xe]  ;;  %v3744_v62 = vcombine.low %v62_v58, %v63_v17  ;;  %v3760_v17 = vld [vmem:[%s4243_s0 + $0x128] ss:$0 sps:$4 sm:$0x11]  }
  0xaf   :  { %v1025_v28 = vrot.slane %v3760_v17, 1  ;;  %v145_v58 = vld [vmem:[%s4243_s0 + $0x144] sm:$0xe] }
  0xb0   :  { %v680_v34 = vshrl.u32 %v3744_v62, 16 }
  0xb1   :  { %1424 = vmatmul.mubr.bf16.gmra.mrb[56].mxu0 %v3564_v1  ;;  %2640 = vmatmul.mubr.bf16.gmra.mrb[56].mxu1 %v999_v9  ;;  %v137_v1 = vld [vmem:[%s4243_s0 + $0xe4] sm:$0xe]  ;;  %v2499_v9 = vcombine.low %v140_v23, %v3698_v24 }
  0xb2   :  { %1431 = vmatprep.mubr.bf16.mxu0 %v630_v2  ;;  %2643 = vmatprep.mubr.bf16.mxu1 %v1002_v3  ;;  %v2496_v26 = vcombine.low %v137_v1, %v61_v40  ;;  %v670_v2 = vshll.u32 %v3703_v15, 16  ;;  %v661_v3 = vor.u32 %v660_v59, %v656_v52  ;;  %v3750_v40 = vld [vmem:[%s4243_s0 + $0x11c] ss:$0 sps:$4 sm:$0x11]  }
  0xb3   :  { %v1018_v45 = vrot.slane %v2499_v9, 1  ;;  %v1022_v27 = vrot.slane %v3750_v40, 1 }
  0xb4   :  { %v1009_v54 = vrot.slane %v2496_v26, 1  ;;  %v672_v14 = vrot.slane %v670_v2, 1  ;;  %v666_v1 = vsel %vm438_vm0, %v661_v3, %v665_v36  ;;  %v64_v26 = vld [vmem:[%s4243_s0 + $0xfc] sm:$0xf] }
  0xb5   :  { %v1020_v47 = vsel %vm951_vm1, %v1018_v45, %v1019_v50  ;;  %v2905_v45 = vld [vmem:[%s4243_s0 + $0x148] sm:$0xf] }
  0xb6   :  { %v1011_v7 = vsel %vm951_vm1, %v1009_v54, %v1010_v32  ;;  %v673_v43 = vor.u32 %v672_v14, %v668_v13  ;;  %v3776_v54 = vcombine.low %v64_v26, %v65_v30  ;;  %v2504_v50 = vcombine.low %v145_v58, %v2905_v45  ;;  %v68_v14 = vld [vmem:[%s4243_s0 + $0x114] sm:$0xf]  ;;  %v2218_v45 = vld [vmem:[%s4246_s3 + $0x20] sm:$0xff] }
  0xb7   :  { %v735_v58 = vshll.u32 %v3760_v17, 16 }
  0xb9   :  { %1432 = vmatmul.mubr.bf16.gmra.mrb[60].mxu0 %v3589_v19  ;;  %2644 = vmatmul.mubr.bf16.gmra.mrb[60].mxu1 %v1005_v22  ;;  %v139_v19 = vld [vmem:[%s4243_s0 + $0xfc] sm:$0xe]  ;;  %v2501_v22 = vcombine.low %v142_v42, %v3739_v51 }
  0xba   :  { %1439 = vmatprep.mubr.bf16.mxu0 %v642_v35  ;;  %2647 = vmatprep.mubr.bf16.mxu1 %v1008_v10  ;;  %v2498_v41 = vcombine.low %v139_v19, %v65_v30  ;;  %v143_v35 = vld [vmem:[%s4243_s0 + $0x12c] sm:$0xe]  ;;  %v677_v10 = vrot.slane %v675_v20, 1  ;;  %v2503_v19 = vcombine.low %v144_v31, %v2902_v39  ;;  %v1037_v20 = vrot.slane %v3188_v29, 1 }
  0xbb   :  { %v1024_v6 = vrot.slane %v2501_v22, 1  ;;  %v2502_v16 = vcombine.low %v143_v35, %v2901_v44 }
  0xbc   :  { %v1015_v60 = vrot.slane %v2498_v41, 1  ;;  %v678_v11 = vsel %vm438_vm0, %v673_v43, %v677_v10  ;;  %v66_v41 = vld [vmem:[%s4243_s0 + $0x108] sm:$0xf] }
  0xbd   :  { %v1026_v23 = vsel %vm951_vm1, %v1024_v6, %v1025_v28  ;;  %v1027_v52 = vrot.slane %v2502_v16, 1  ;;  %v3807_v36 = vcombine.low %v66_v41, %v3698_v24  ;;  %v2906_v24 = vld [vmem:[%s4243_s0 + $0x154] sm:$0xf]  ;;  %v148_v43 = vld [vmem:[%s4243_s0 + $0x168] sm:$0xe]  ;;  %v711_v28 = vshll.u32 %v3718_v63, 16 }
  0xbe   :  { %v1017_v5 = vsel %vm951_vm1, %v1015_v60, %v1016_v48  ;;  %v694_v60 = vshll.u32 %v3776_v54, 16  ;;  %v146_v48 = vld [vmem:[%s4243_s0 + $0x150] sm:$0xe]  ;;  %v2507_v44 = vcombine.low %v148_v43, %v3256_v4  ;;  %v1040_v16 = vrot.slane %v3238_v61, 1  ;;  %v149_v4 = vld [vmem:[%s4243_s0 + $0x174] sm:$0xe] }
  0xbf   :  { %v2505_v13 = vcombine.low %v146_v48, %v2906_v24  ;;  %v704_v29 = vshrl.u32 %v3807_v36, 16  ;;  %v1043_v63 = vrot.slane %v3287_v25, 1  ;;  %v713_v39 = vrot.slane %v711_v28, 1  ;;  %v2215_v48 = vld [vmem:[%s4246_s3 + $0x8] sm:$0xff]  ;;  %v2222_v24 = vld [vmem:[%s4246_s3 + $0x40] sm:$0xff]  ;;  %v2225_v43 = vld [vmem:[%s4246_s3 + $0x58] sm:$0xff] }
  0xc1   :  { %1440 = vmatmul.mubr.bf16.gmra.mrb[64].mxu0 %v3612_v37  ;;  %2648 = vmatmul.mubr.bf16.gmra.mrb[64].mxu1 %v1011_v7  ;;  %v3731_v37 = vld [vmem:[%s4243_s0 + $0x118] sm:$0xf]  ;;  %v687_v7 = vshll.u32 %v3680_v49, 16  ;;  %v2904_v49 = vld [vmem:[%s4243_s0 + $0x140] ss:$0 sps:$4 sm:$0x11]  }
  0xc2   :  { %1447 = vmatprep.mubr.bf16.mxu0 %v654_v18  ;;  %2651 = vmatprep.mubr.bf16.mxu1 %v1014_v55  ;;  %v2500_v12 = vcombine.low %v141_v56, %v3731_v37  ;;  %v1028_v18 = vrot.slane %v2903_v53, 1  ;;  %v1030_v55 = vrot.slane %v2503_v19, 1  ;;  %v1031_v59 = vrot.slane %v2904_v49, 1 }
  0xc3   :  { %v689_v9 = vrot.slane %v687_v7, 1  ;;  %v692_v56 = vshrl.u32 %v3776_v54, 16  ;;  %v2436_v35 = vcombine.low %v68_v14, %v3731_v37  ;;  %v70_v37 = vld [vmem:[%s4243_s0 + $0x120] sm:$0xf]  ;;  %v1042_v19 = vrot.slane %v2507_v44, 1 }
  0xc4   :  { %v1021_v8 = vrot.slane %v2500_v12, 1  ;;  %v1029_v2 = vsel %vm951_vm1, %v1027_v52, %v1028_v18  ;;  %v1032_v3 = vsel %vm951_vm1, %v1030_v55, %v1031_v59  ;;  %v699_v12 = vshll.u32 %v3709_v46, 16 }
  0xc5   :  { %v716_v7 = vshrl.u32 %v2436_v35, 16  ;;  %v1044_v61 = vsel %vm951_vm1, %v1042_v19, %v1043_v63  ;;  %v723_v52 = vshll.u32 %v3750_v40, 16  ;;  %v2228_v63 = vld [vmem:[%s4246_s3 + $0x70] sm:$0xff] }
  0xc6   :  { %v1023_v32 = vsel %vm951_vm1, %v1021_v8, %v1022_v27  ;;  %v701_v26 = vrot.slane %v699_v12, 1  ;;  %v1036_v8 = vrot.slane %v2505_v13, 1  ;;  %v706_v27 = vshll.u32 %v3807_v36, 16  ;;  %v2223_v13 = vld [vmem:[%s4246_s3 + $0x48] sm:$0xff] }
  0xc7   :  { %v725_v55 = vrot.slane %v723_v52, 1 }
  0xc8   :  { %v1038_v31 = vsel %vm951_vm1, %v1036_v8, %v1037_v20 }
  0xc9   :  { %1448 = vmatmul.mubr.bf16.gmra.mrb[68].mxu0 %v3635_v21  ;;  %2652 = vmatmul.mubr.bf16.gmra.mrb[68].mxu1 %v1017_v5  ;;  %v682_v21 = vshll.u32 %v3744_v62, 16  ;;  %v696_v5 = vrot.slane %v694_v60, 1 }
  0xca   :  { %1455 = vmatprep.mubr.bf16.mxu0 %v666_v1  ;;  %2655 = vmatprep.mubr.bf16.mxu1 %v1020_v47  ;;  %v1033_v1 = vrot.slane %v2504_v50, 1  ;;  %v2907_v47 = vld [vmem:[%s4243_s0 + $0x14c] ss:$0 sps:$4 sm:$0x11]  }
  0xcb   :  { %v684_v30 = vrot.slane %v682_v21, 1  ;;  %v1034_v46 = vrot.slane %v2907_v47, 1  ;;  %v697_v22 = vor.u32 %v696_v5, %v692_v56  ;;  %v2219_v50 = vld [vmem:[%s4246_s3 + $0x28] sm:$0xff]  ;;  %v2221_v5 = vld [vmem:[%s4246_s3 + $0x38] sm:$0xff]  ;;  %v2729_v47 = vpack.c.bf16 %v2223_v13, %v2222_v24 }
  0xcc   :  { %v2721_v56 = vpack.c.bf16 %v2219_v50, %v2218_v45 }
  0xcd   :  { %v1035_v10 = vsel %vm951_vm1, %v1033_v1, %v1034_v46  ;;  %v702_v21 = vsel %vm438_vm0, %v697_v22, %v701_v26 }
  0xd1   :  { %1456 = vmatmul.mubr.bf16.gmra.mrb[72].mxu0 %v3666_v57  ;;  %2656 = vmatmul.mubr.bf16.gmra.mrb[72].mxu1 %v1023_v32  ;;  %v685_v57 = vor.u32 %v684_v30, %v680_v34  ;;  %v708_v32 = vrot.slane %v706_v27, 1  ;;  %v2508_v30 = vcombine.low %v149_v4, %v3304_v33  ;;  %v2224_v27 = vld [vmem:[%s4246_s3 + $0x50] sm:$0xff] }
  0xd2   :  { %1463 = vmatprep.mubr.bf16.mxu0 %v678_v11  ;;  %2659 = vmatprep.mubr.bf16.mxu1 %v1026_v23  ;;  %v2437_v11 = vcombine.low %v70_v37, %v3739_v51  ;;  %v1046_v51 = vrot.slane %v3335_v0, 1  ;;  %v2214_v0 = vld [vmem:[%s4246_s3] sm:$0xff] }
  0xd3   :  { %v690_v42 = vsel %vm438_vm0, %v685_v57, %v689_v9  ;;  %v709_v34 = vor.u32 %v708_v32, %v704_v29  ;;  %v1045_v53 = vrot.slane %v2508_v30, 1  ;;  %v2713_v17 = vpack.c.bf16 %v2215_v48, %v2214_v0 }
  0xd4   :  { %v730_v49 = vshll.u32 %v2437_v11, 16  ;;  %v728_v57 = vshrl.u32 %v2437_v11, 16 }
  0xd5   :  { %v714_v41 = vsel %vm438_vm0, %v709_v34, %v713_v39  ;;  %v1047_v33 = vsel %vm951_vm1, %v1045_v53, %v1046_v51  ;;  %2714 = vmatprep.subr.bf16.mxu1 %v2713_v17  ;;  %v2229_v34 = vld [vmem:[%s4246_s3 + $0x78] sm:$0xff] }
  0xd6   :  { %v732_v9 = vrot.slane %v730_v49, 1  ;;  %2716 = vmatpush3.bf16.msra.mxu1 %v2713_v17  ;;  %v2741_v39 = vpack.c.bf16 %v2229_v34, %v2228_v63 }
  0xd8   :  { %v733_v40 = vor.u32 %v732_v9, %v728_v57 }
  0xd9   :  { %1464 = vmatmul.mubr.bf16.gmra.mrb[76].mxu0 %v3703_v15  ;;  %2660 = vmatmul.mubr.bf16.gmra.mrb[76].mxu1 %v1029_v2  ;;  %v147_v15 = vld [vmem:[%s4243_s0 + $0x15c] sm:$0xe] }
  0xda   :  { %1471 = vmatprep.mubr.bf16.mxu0 %v690_v42  ;;  %2663 = vmatprep.mubr.bf16.mxu1 %v1032_v3  ;;  %v2506_v6 = vcombine.low %v147_v15, %v3208_v38  ;;  %v2217_v2 = vld [vmem:[%s4246_s3 + $0x18] sm:$0xff]  ;;  %v2220_v42 = vld [vmem:[%s4246_s3 + $0x30] sm:$0xff] }
  0xdb   :  { %v2725_v12 = vpack.c.bf16 %v2221_v5, %v2220_v42  ;;  %v1921_v5 = vlaneseq }
  0xdc   :  { %v1039_v38 = vrot.slane %v2506_v6, 1  ;;  %v2227_v6 = vld [vmem:[%s4246_s3 + $0x68] sm:$0xff] }
  0xde   :  { %v1041_v23 = vsel %vm951_vm1, %v1039_v38, %v1040_v16 }
  0xe1   :  { %1472 = vmatmul.mubr.bf16.gmra.mrb[80].mxu0 %v3744_v62  ;;  %2664 = vmatmul.mubr.bf16.gmra.mrb[80].mxu1 %v1035_v10  ;;  %v718_v62 = vshll.u32 %v2436_v35, 16  ;;  %v2226_v10 = vld [vmem:[%s4246_s3 + $0x60] sm:$0xff] }
  0xe2   :  { %1479 = vmatprep.mubr.bf16.mxu0 %v702_v21  ;;  %2667 = vmatprep.mubr.bf16.mxu1 %v1038_v31  ;;  %v2737_v21 = vpack.c.bf16 %v2227_v6, %v2226_v10 }
  0xe3   :  { %v720_v25 = vrot.slane %v718_v62, 1 }
  0xe5   :  { %v721_v18 = vor.u32 %v720_v25, %v716_v7 }
  0xe7   :  { %v726_v59 = vsel %vm438_vm0, %v721_v18, %v725_v55 }
  0xe9   :  { %1480 = vmatmul.mubr.bf16.gmra.mrb[84].mxu0 %v3776_v54  ;;  %2668 = vmatmul.mubr.bf16.gmra.mrb[84].mxu1 %v1041_v23  ;;  %v737_v54 = vrot.slane %v735_v58, 1 }
  0xea   :  { %1487 = vmatprep.mubr.bf16.mxu0 %v714_v41  ;;  %2671 = vmatprep.mubr.bf16.mxu1 %v1044_v61 }
  0xeb   :  { %v738_v60 = vsel %vm438_vm0, %v733_v40, %v737_v54 }
  0xf1   :  { %1488 = vmatmul.mubr.bf16.gmra.mrb[88].mxu0 %v3807_v36  ;;  %2672 = vmatmul.mubr.bf16.gmra.mrb[88].mxu1 %v1047_v33  ;;  %v2216_v36 = vld [vmem:[%s4246_s3 + $0x10] sm:$0xff] }
  0xf2   :  { %1495 = vmatprep.mubr.bf16.mxu0 %v726_v59  ;;  %v2717_v3 = vpack.c.bf16 %v2217_v2, %v2216_v36 }
  0xf4   :  { %2718 = vmatprep.subr.bf16.mxu1 %v2717_v3 }
  0xf5   :  { %2720 = vmatpush3.bf16.msra.mxu1 %v2717_v3 }
  0xf6   :  { %2722 = vmatprep.subr.bf16.mxu1 %v2721_v56 }
  0xf9   :  { %1496 = vmatmul.mubr.bf16.gmra.mrb[92].mxu0 %v2436_v35  ;;  %2724 = vmatpush3.bf16.msra.mxu1 %v2721_v56  ;;  %v2733_v35 = vpack.c.bf16 %v2225_v43, %v2224_v27 }
  0xfa   :  { %1503 = vmatprep.mubr.bf16.mxu0 %v738_v60  ;;  %2726 = vmatprep.subr.bf16.mxu1 %v2725_v12 }
  0xfd   :  { %2728 = vmatpush3.bf16.msra.mxu1 %v2725_v12 }
  0xfe   :  { %2730 = vmatprep.subr.bf16.mxu1 %v2729_v47 }
 0x101   :  { %1504 = vmatmul.mubr.bf16.gmra.mrb[96].mxu0 %v2437_v11  ;;  %2732 = vmatpush3.bf16.msra.mxu1 %v2729_v47 }
 0x102   :  { %2734 = vmatprep.subr.bf16.mxu1 %v2733_v35 }
 0x105   :  { %2736 = vmatpush3.bf16.msra.mxu1 %v2733_v35 }
 0x106   :  { %2738 = vmatprep.subr.bf16.mxu1 %v2737_v21 }
 0x109   :  { %2740 = vmatpush3.bf16.msra.mxu1 %v2737_v21 }
 0x10a   :  { %2742 = vmatprep.subr.bf16.mxu1 %v2741_v39 }
 0x10d   :  { %2744 = vmatpush3.bf16.msra.mxu1 %v2741_v39 }
 0x114   :  { %v3895_v14 = vpop.f32.mrb[0].mxu0  ;;  %v3897_v1 = vpop.f32.mrb[0].mxu1 }
 0x115   :  { %v1315_v46 = vpop.f32.mrb[1].mxu0  ;;  %v1515_v20 = vpop.f32.mrb[1].mxu1 }
 0x116   :  { %v3899_v22 = vpop.f32.mrb[2].mxu0  ;;  %v3901_v26 = vpop.f32.mrb[2].mxu1 }
 0x117   :  { %v1318_v8 = vpop.f32.mrb[3].mxu0  ;;  %v1518_v15 = vpop.f32.mrb[3].mxu1 }
 0x118   :  { %v1922_v8 = vshrl.u32 %v1921_v5, 7  ;;  %v3964_v15 = vld [vmem:[%s4245_s2] ss:$0 sm:$0xff] }
 0x119   :  { %v1314_v43 = vadd.f32 %v3964_v15, %v3895_v14 }
 0x11a   :  { %v3971_v6 = vadd.s32 8, %v1922_v8 }
 0x11c   :  { %v1321_v29 = vpop.f32.mrb[4].mxu0  ;;  %v3915_v28 = vpop.f32.mrb[4].mxu1  ;;  %vm1925_vm2 = vcmp.lt.s32.totalorder %v3971_v6, 14 }
 0x11d   :  { %v1323_v31 = vpop.f32.mrb[5].mxu0  ;;  %v1523_v32 = vpop.f32.mrb[5].mxu1  ;;  %v1322_v27 = vadd.f32 %v3964_v15, %v1321_v29 }
 0x11e   :  { %v1324_v44 = vpop.f32.mrb[6].mxu0  ;;  %v3917_v37 = vpop.f32.mrb[6].mxu1 }
 0x11f   :  { %v1326_v38 = vpop.f32.mrb[7].mxu0  ;;  %v1526_v16 = vpop.f32.mrb[7].mxu1  ;;  %v1325_v21 = vadd.f32 %v3964_v15, %v1324_v44 }
 0x120   :  { %v1317_v16 = vadd.f32 %v3964_v15, %v3899_v22 }
 0x124   :  { %v3925_v19 = vpop.f32.mrb[8].mxu0  ;;  %v3927_v4 = vpop.f32.mrb[8].mxu1 }
 0x125   :  { %v1331_v62 = vpop.f32.mrb[9].mxu0  ;;  %v1531_v11 = vpop.f32.mrb[9].mxu1  ;;  %v1330_v22 = vadd.f32 %v3964_v15, %v3925_v19 }
 0x126   :  { %v3929_v23 = vpop.f32.mrb[10].mxu0  ;;  %v3931_v30 = vpop.f32.mrb[10].mxu1 }
 0x127   :  { %v1334_v7 = vpop.f32.mrb[11].mxu0  ;;  %v1534_v41 = vpop.f32.mrb[11].mxu1 }
 0x12c   :  { %v1337_v61 = vpop.f32.mrb[12].mxu0  ;;  %v3933_v25 = vpop.f32.mrb[12].mxu1 }
 0x12d   :  { %v1339_v52 = vpop.f32.mrb[13].mxu0  ;;  %v1539_v53 = vpop.f32.mrb[13].mxu1  ;;  %v1338_v44 = vadd.f32 %v3964_v15, %v1337_v61 }
 0x12e   :  { %v1340_v51 = vpop.f32.mrb[14].mxu0  ;;  %v3935_v18 = vpop.f32.mrb[14].mxu1 }
 0x12f   :  { %v1342_v55 = vpop.f32.mrb[15].mxu0  ;;  %v1542_v49 = vpop.f32.mrb[15].mxu1 }
 0x134   :  { %v3937_v33 = vpop.f32.mrb[16].mxu0  ;;  %v3939_v59 = vpop.f32.mrb[16].mxu1 }
 0x135   :  { %v1347_v57 = vpop.f32.mrb[17].mxu0  ;;  %v1547_v9 = vpop.f32.mrb[17].mxu1 }
 0x136   :  { %v3941_v58 = vpop.f32.mrb[18].mxu0  ;;  %v3943_v40 = vpop.f32.mrb[18].mxu1 }
 0x137   :  { %v1350_v54 = vpop.f32.mrb[19].mxu0  ;;  %v1550_v60 = vpop.f32.mrb[19].mxu1 }
 0x138   :  { %v1341_v60 = vadd.f32 %v3964_v15, %v1340_v51 }
 0x13c   :  { %v3945_v0 = vpop.f32.mrb[20].mxu0  ;;  %v3947_v48 = vpop.f32.mrb[20].mxu1 }
 0x13d   :  { %v1355_v17 = vpop.f32.mrb[21].mxu0  ;;  %v1555_v36 = vpop.f32.mrb[21].mxu1 }
 0x13e   :  { %v3949_v2 = vpop.f32.mrb[22].mxu0  ;;  %v3951_v3 = vpop.f32.mrb[22].mxu1 }
 0x13f   :  { %v1358_v45 = vpop.f32.mrb[23].mxu0  ;;  %v1558_v50 = vpop.f32.mrb[23].mxu1 }
 0x140   :  { %v1333_v50 = vadd.f32 %v3964_v15, %v3929_v23 }
 0x144   :  { %v3953_v56 = vpop.f32.mrb[24].mxu0  ;;  %v3955_v42 = vpop.f32.mrb[24].mxu1 }
 0x145   :  { %v1363_v12 = vpop.f32.mrb[25].mxu0  ;;  %v1563_v24 = vpop.f32.mrb[25].mxu1 }
 0x146   :  { %v3957_v13 = vpop.f32.mrb[26].mxu0  ;;  %v3959_v47 = vpop.f32.mrb[26].mxu1 }
 0x147   :  { %v1366_v46 = vpop.f32.mrb[27].mxu0  ;;  %v1566_v20 = vpop.f32.mrb[27].mxu1 }
 0x14c   :  { %v3969_v35 = vpop.f32.mrb[28].mxu0  ;;  %v2613_v10 = vpop.f32.mrb[28].mxu1 }
 0x14d   :  { %v1611_v31 = vadd.f32 %v2613_v10, %v1322_v27  ;;  %v1371_v32 = vpop.f32.mrb[29].mxu0  ;;  %v1602_v38 = vpop.f32.mrb[29].mxu1 }
 0x14e   :  { %v1603_v63 = vadd.f32 %v1602_v38, %v1314_v43  ;;  %v3976_v34 = vpop.f32.mrb[30].mxu0  ;;  %v2614_v29 = vpop.f32.mrb[30].mxu1 }
 0x14f   :  { %v1614_v39 = vadd.f32 %v2614_v29, %v1325_v21  ;;  %v1374_v62 = vpop.f32.mrb[31].mxu0  ;;  %v1605_v14 = vpop.f32.mrb[31].mxu1  ;;  %v1859_v41 = vmax.f32 %v1611_v31, 0.0 }
 0x150   :  { %v1606_v11 = vadd.f32 %v1605_v14, %v1317_v16  ;;  %v1857_v53 = vmax.f32 %v1603_v63, 0.0  ;;  %v1354_v16 = vadd.f32 %v3964_v15, %v3945_v0 }
 0x151   :  { %v1860_v7 = vmax.f32 %v1614_v39, 0.0  ;;  %v1346_v39 = vadd.f32 %v3964_v15, %v3937_v33 }
 0x152   :  { %v1858_v52 = vmax.f32 %v1606_v11, 0.0 }
 0x153   :  { %v1929_v55 = vsel %vm1925_vm2, %v1860_v7, 0.0 }
 0x154   :  { %v1997_v49 = vmax.f32 %v1859_v41, %v1929_v55  ;;  %v1927_v57 = vsel %vm1925_vm2, %v1858_v52, 0.0  ;;  %v3986_v9 = vpop.f32.mrb[32].mxu0  ;;  %v2617_v54 = vpop.f32.mrb[32].mxu1 }
 0x155   :  { %v1990_v17 = vmax.f32 %v1857_v53, %v1927_v57  ;;  %v1627_v36 = vadd.f32 %v2617_v54, %v1338_v44  ;;  %v1379_v45 = vpop.f32.mrb[33].mxu0  ;;  %v1618_v61 = vpop.f32.mrb[33].mxu1 }
 0x156   :  { %v1998_v5 = vrot.slane %v1997_v49, 4  ;;  %v1619_v12 = vadd.f32 %v1618_v61, %v1330_v22  ;;  %v3991_v24 = vpop.f32.mrb[34].mxu0  ;;  %v2618_v19 = vpop.f32.mrb[34].mxu1  ;;  %v1357_v22 = vadd.f32 %v3964_v15, %v3949_v2 }
 0x157   :  { %v1991_v46 = vrot.slane %v1990_v17, 4  ;;  %v1630_v20 = vadd.f32 %v2618_v19, %v1341_v60  ;;  %v1382_v8 = vpop.f32.mrb[35].mxu0  ;;  %v1621_v27 = vpop.f32.mrb[35].mxu1  ;;  %v1863_v32 = vmax.f32 %v1627_v36, 0.0 }
 0x158   :  { %v1999_v43 = vmax.f32 %v1997_v49, %v1998_v5  ;;  %v1622_v10 = vadd.f32 %v1621_v27, %v1333_v50  ;;  %v1861_v63 = vmax.f32 %v1619_v12, 0.0  ;;  %v1362_v8 = vadd.f32 %v3964_v15, %v3953_v56 }
 0x159   :  { %v1992_v21 = vmax.f32 %v1990_v17, %v1991_v46  ;;  %v1864_v51 = vmax.f32 %v1630_v20, 0.0  ;;  %v1349_v17 = vadd.f32 %v3964_v15, %v3941_v58  ;;  %v1373_v56 = vadd.f32 %v3964_v15, %v3976_v34 }
 0x15a   :  { %v2000_v31 = vrot.slane %v1999_v43, 2  ;;  %v1862_v38 = vmax.f32 %v1622_v10, 0.0 }
 0x15b   :  { %v1993_v23 = vrot.slane %v1992_v21, 2  ;;  %v1933_v29 = vsel %vm1925_vm2, %v1864_v51, 0.0 }
 0x15c   :  { %v2001_v62 = vmax.f32 %v1999_v43, %v2000_v31  ;;  %v2011_v14 = vmax.f32 %v1863_v32, %v1933_v29  ;;  %v1931_v11 = vsel %vm1925_vm2, %v1862_v38, 0.0  ;;  %v4001_v7 = vpop.f32.mrb[36].mxu0  ;;  %v2621_v41 = vpop.f32.mrb[36].mxu1  ;;  %v1370_v31 = vadd.f32 %v3964_v15, %v3969_v35 }
 0x15d   :  { %v1994_v52 = vmax.f32 %v1992_v21, %v1993_v23  ;;  %v2004_v44 = vmax.f32 %v1861_v63, %v1931_v11  ;;  %v1643_v53 = vadd.f32 %v2621_v41, %v1354_v16  ;;  %v1387_v0 = vpop.f32.mrb[37].mxu0  ;;  %v1634_v55 = vpop.f32.mrb[37].mxu1 }
 0x15e   :  { %v2002_v49 = vrot.slane %v2001_v62, 1  ;;  %v2012_v57 = vrot.slane %v2011_v14, 4  ;;  %v1635_v54 = vadd.f32 %v1634_v55, %v1346_v39  ;;  %v4005_v33 = vpop.f32.mrb[38].mxu0  ;;  %v2622_v60 = vpop.f32.mrb[38].mxu1  ;;  %v1365_v55 = vadd.f32 %v3964_v15, %v3957_v13 }
 0x15f   :  { %v1995_v36 = vrot.slane %v1994_v52, 1  ;;  %v2005_v45 = vrot.slane %v2004_v44, 4  ;;  %v1390_v61 = vpop.f32.mrb[39].mxu0  ;;  %v1637_v50 = vpop.f32.mrb[39].mxu1  ;;  %v1646_v19 = vadd.f32 %v2622_v60, %v1357_v22  ;;  %v1867_v58 = vmax.f32 %v1643_v53, 0.0 }
 0x160   :  { %v2003_v5 = vmax.f32 %v2001_v62, %v2002_v49  ;;  %v2013_v12 = vmax.f32 %v2011_v14, %v2012_v57  ;;  %v1638_v2 = vadd.f32 %v1637_v50, %v1349_v17  ;;  %v1865_v38 = vmax.f32 %v1635_v54, 0.0 }
 0x161   :  { %v1996_v46 = vmax.f32 %v1994_v52, %v1995_v36  ;;  %v2006_v20 = vmax.f32 %v2004_v44, %v2005_v45  ;;  %v1868_v43 = vmax.f32 %v1646_v19, 0.0  ;;  %v1378_v60 = vadd.f32 %v3964_v15, %v3986_v9 }
 0x162   :  { %v2014_v27 = vrot.slane %v2013_v12, 2  ;;  %v1866_v51 = vmax.f32 %v1638_v2, 0.0 }
 0x163   :  { %v2270_v10 = vsel %vm2269_vm3, %v2003_v5, %v1996_v46  ;;  %v2007_v21 = vrot.slane %v2006_v20, 2  ;;  %v1937_v16 = vsel %vm1925_vm2, %v1868_v43, 0.0 }
 0x164   :  { %v2015_v32 = vmax.f32 %v2013_v12, %v2014_v27  ;;  %v4016_v23 = vpop.f32.mrb[40].mxu0  ;;  %v2625_v63 = vpop.f32.mrb[40].mxu1  ;;  %v2025_v39 = vmax.f32 %v1867_v58, %v1937_v16  ;;  %v1935_v62 = vsel %vm1925_vm2, %v1866_v51, 0.0  ;;  %v1386_v12 = vadd.f32 %v3964_v15, %v4001_v7 }
 0x165   :  { %v2008_v29 = vmax.f32 %v2006_v20, %v2007_v21  ;;  %v1395_v14 = vpop.f32.mrb[41].mxu0  ;;  %v1650_v11 = vpop.f32.mrb[41].mxu1  ;;  %v2018_v35 = vmax.f32 %v1865_v38, %v1935_v62  ;;  %v1659_v52 = vadd.f32 %v2625_v63, %v1370_v31  ;;  %v1389_v31 = vadd.f32 %v3964_v15, %v4005_v33 }
 0x166   :  { %v2016_v41 = vrot.slane %v2015_v32, 1  ;;  %v1651_v44 = vadd.f32 %v1650_v11, %v1362_v8  ;;  %v4022_v53 = vpop.f32.mrb[42].mxu0  ;;  %v2626_v0 = vpop.f32.mrb[42].mxu1  ;;  %v2026_v49 = vrot.slane %v2025_v39, 4  ;;  %v1381_v11 = vadd.f32 %v3964_v15, %v3991_v24 }
 0x167   :  { %v2009_v22 = vrot.slane %v2008_v29, 1  ;;  %v1662_v34 = vadd.f32 %v2626_v0, %v1373_v56  ;;  %v1398_v57 = vpop.f32.mrb[43].mxu0  ;;  %v1653_v54 = vpop.f32.mrb[43].mxu1  ;;  %v2019_v17 = vrot.slane %v2018_v35, 4  ;;  %v1871_v19 = vmax.f32 %v1659_v52, 0.0 }
 0x168   :  { %v2027_v45 = vmax.f32 %v2025_v39, %v2026_v49  ;;  %v1654_v50 = vadd.f32 %v1653_v54, %v1365_v55  ;;  %v2017_v5 = vmax.f32 %v2015_v32, %v2016_v41  ;;  %v1869_v27 = vmax.f32 %v1651_v44, 0.0 }
 0x169   :  { %v2010_v36 = vmax.f32 %v2008_v29, %v2009_v22  ;;  %v1872_v61 = vmax.f32 %v1662_v34, 0.0  ;;  %v2020_v13 = vmax.f32 %v2018_v35, %v2019_v17  ;;  %v1394_v22 = vadd.f32 %v3964_v15, %v4016_v23 }
 0x16a   :  { %v2028_v46 = vrot.slane %v2027_v45, 2  ;;  %v1870_v2 = vmax.f32 %v1654_v50, 0.0 }
 0x16b   :  { %v1941_v20 = vsel %vm1925_vm2, %v1872_v61, 0.0  ;;  %v2272_v9 = vsel %vm2271_vm4, %v2010_v36, %v2270_v10  ;;  %v2021_v8 = vrot.slane %v2020_v13, 2 }
 0x16c   :  { %v2039_v43 = vmax.f32 %v1871_v19, %v1941_v20  ;;  %v1401_v21 = vpop.f32.mrb[44].mxu0  ;;  %v2629_v58 = vpop.f32.mrb[44].mxu1  ;;  %v2274_v51 = vsel %vm2273_vm5, %v2017_v5, %v2272_v9  ;;  %v2029_v7 = vmax.f32 %v2027_v45, %v2028_v46  ;;  %v1939_v32 = vsel %vm1925_vm2, %v1870_v2, 0.0 }
 0x16d   :  { %v1675_v38 = vadd.f32 %v2629_v58, %v1386_v12  ;;  %v1403_v16 = vpop.f32.mrb[45].mxu0  ;;  %v1666_v63 = vpop.f32.mrb[45].mxu1  ;;  %v2022_v56 = vmax.f32 %v2020_v13, %v2021_v8  ;;  %v2032_v10 = vmax.f32 %v1869_v27, %v1939_v32  ;;  %v1402_v49 = vadd.f32 %v3964_v15, %v1401_v21 }
 0x16e   :  { %v2040_v29 = vrot.slane %v2039_v43, 4  ;;  %v1667_v39 = vadd.f32 %v1666_v63, %v1378_v60  ;;  %v1404_v62 = vpop.f32.mrb[46].mxu0  ;;  %v2630_v14 = vpop.f32.mrb[46].mxu1  ;;  %v2030_v41 = vrot.slane %v2029_v7, 1  ;;  %v1397_v16 = vadd.f32 %v3964_v15, %v4022_v53 }
 0x16f   :  { %v1678_v35 = vadd.f32 %v2630_v14, %v1389_v31  ;;  %v1406_v52 = vpop.f32.mrb[47].mxu0  ;;  %v1669_v33 = vpop.f32.mrb[47].mxu1  ;;  %v2023_v44 = vrot.slane %v2022_v56, 1  ;;  %v2033_v55 = vrot.slane %v2032_v10, 4  ;;  %v1875_v24 = vmax.f32 %v1675_v38, 0.0 }
 0x170   :  { %v2041_v0 = vmax.f32 %v2039_v43, %v2040_v29  ;;  %v1670_v57 = vadd.f32 %v1669_v33, %v1381_v11  ;;  %v2031_v36 = vmax.f32 %v2029_v7, %v2030_v41  ;;  %v1873_v45 = vmax.f32 %v1667_v39, 0.0 }
 0x171   :  { %v1876_v34 = vmax.f32 %v1678_v35, 0.0  ;;  %v2024_v54 = vmax.f32 %v2022_v56, %v2023_v44  ;;  %v2034_v17 = vmax.f32 %v2032_v10, %v2033_v55  ;;  %v1405_v20 = vadd.f32 %v3964_v15, %v1404_v62 }
 0x172   :  { %v2042_v60 = vrot.slane %v2041_v0, 2  ;;  %v1874_v50 = vmax.f32 %v1670_v57, 0.0 }
 0x173   :  { %v1945_v61 = vsel %vm1925_vm2, %v1876_v34, 0.0  ;;  %v2035_v12 = vrot.slane %v2034_v17, 2  ;;  %v2276_v23 = vsel %vm2275_vm6, %v2024_v54, %v2274_v51 }
 0x174   :  { %v2043_v5 = vmax.f32 %v2041_v0, %v2042_v60  ;;  %v2053_v13 = vmax.f32 %v1875_v24, %v1945_v61  ;;  %v1409_v19 = vpop.f32.mrb[48].mxu0  ;;  %v2633_v46 = vpop.f32.mrb[48].mxu1  ;;  %v1943_v2 = vsel %vm1925_vm2, %v1874_v50, 0.0  ;;  %v2278_v43 = vsel %vm2277_vm7, %v2031_v36, %v2276_v23 }
 0x175   :  { %v1691_v9 = vadd.f32 %v2633_v46, %v1402_v49  ;;  %v1411_v8 = vpop.f32.mrb[49].mxu0  ;;  %v1682_v27 = vpop.f32.mrb[49].mxu1  ;;  %v2036_v21 = vmax.f32 %v2034_v17, %v2035_v12  ;;  %v2046_v31 = vmax.f32 %v1873_v45, %v1943_v2  ;;  %v1410_v17 = vadd.f32 %v3964_v15, %v1409_v19 }
 0x176   :  { %v2054_v58 = vrot.slane %v2053_v13, 4  ;;  %v1683_v7 = vadd.f32 %v1682_v27, %v1394_v22  ;;  %v1412_v32 = vpop.f32.mrb[50].mxu0  ;;  %v2634_v38 = vpop.f32.mrb[50].mxu1  ;;  %v2044_v29 = vrot.slane %v2043_v5, 1 }
 0x177   :  { %v1694_v51 = vadd.f32 %v2634_v38, %v1405_v20  ;;  %v1414_v63 = vpop.f32.mrb[51].mxu0  ;;  %v1685_v56 = vpop.f32.mrb[51].mxu1  ;;  %v2037_v10 = vrot.slane %v2036_v21, 1  ;;  %v2047_v62 = vrot.slane %v2046_v31, 4  ;;  %v1879_v52 = vmax.f32 %v1691_v9, 0.0 }
 0x178   :  { %v2055_v39 = vmax.f32 %v2053_v13, %v2054_v58  ;;  %v1686_v11 = vadd.f32 %v1685_v56, %v1397_v16  ;;  %v1877_v44 = vmax.f32 %v1683_v7, 0.0  ;;  %v2045_v55 = vmax.f32 %v2043_v5, %v2044_v29 }
 0x179   :  { %v1880_v14 = vmax.f32 %v1694_v51, 0.0  ;;  %v2048_v35 = vmax.f32 %v2046_v31, %v2047_v62  ;;  %v2038_v33 = vmax.f32 %v2036_v21, %v2037_v10  ;;  %v1413_v2 = vadd.f32 %v3964_v15, %v1412_v32 }
 0x17a   :  { %v2056_v41 = vrot.slane %v2055_v39, 2  ;;  %v1878_v53 = vmax.f32 %v1686_v11, 0.0 }
 0x17b   :  { %v1949_v0 = vsel %vm1925_vm2, %v1880_v14, 0.0  ;;  %v2049_v49 = vrot.slane %v2048_v35, 2  ;;  %v2280_v60 = vsel %vm2279_vm8, %v2038_v33, %v2278_v43 }
 0x17c   :  { %v2057_v22 = vmax.f32 %v2055_v39, %v2056_v41  ;;  %v2067_v34 = vmax.f32 %v1879_v52, %v1949_v0  ;;  %v1417_v57 = vpop.f32.mrb[52].mxu0  ;;  %v2637_v54 = vpop.f32.mrb[52].mxu1  ;;  %v1947_v24 = vsel %vm1925_vm2, %v1878_v53, 0.0  ;;  %v2282_v50 = vsel %vm2281_vm9, %v2045_v55, %v2280_v60 }
 0x17d   :  { %v1418_v36 = vadd.f32 %v3964_v15, %v1417_v57  ;;  %v1419_v45 = vpop.f32.mrb[53].mxu0  ;;  %v1698_v61 = vpop.f32.mrb[53].mxu1  ;;  %v2050_v5 = vmax.f32 %v2048_v35, %v2049_v49  ;;  %v2060_v46 = vmax.f32 %v1877_v44, %v1947_v24  ;;  %2707 = vmatprep.mubr.f32.mxu1 %v2282_v50 }
 0x17e   :  { %v2058_v12 = vrot.slane %v2057_v22, 1  ;;  %v2068_v13 = vrot.slane %v2067_v34, 4  ;;  %v1420_v23 = vpop.f32.mrb[54].mxu0  ;;  %v2638_v20 = vpop.f32.mrb[54].mxu1  ;;  %v1699_v19 = vadd.f32 %v1698_v61, %v1410_v17 }
 0x17f   :  { %v1707_v9 = vadd.f32 %v2637_v54, %v1418_v36  ;;  %v1421_v8 = vadd.f32 %v3964_v15, %v1420_v23  ;;  %v1422_v27 = vpop.f32.mrb[55].mxu0  ;;  %v1701_v43 = vpop.f32.mrb[55].mxu1  ;;  %v2051_v58 = vrot.slane %v2050_v5, 1  ;;  %v2061_v7 = vrot.slane %v2060_v46, 4 }
 0x180   :  { %v2059_v21 = vmax.f32 %v2057_v22, %v2058_v12  ;;  %v2069_v31 = vmax.f32 %v2067_v34, %v2068_v13  ;;  %v1702_v16 = vadd.f32 %v1701_v43, %v1413_v2  ;;  %v1881_v11 = vmax.f32 %v1699_v19, 0.0 }
 0x181   :  { %v1710_v38 = vadd.f32 %v2638_v20, %v1421_v8  ;;  %v2052_v51 = vmax.f32 %v2050_v5, %v2051_v58  ;;  %v2062_v56 = vmax.f32 %v2060_v46, %v2061_v7  ;;  %v1883_v29 = vmax.f32 %v1707_v9, 0.0 }
 0x182   :  { %v2070_v63 = vrot.slane %v2069_v31, 2  ;;  %v1882_v39 = vmax.f32 %v1702_v16, 0.0 }
 0x183   :  { %v1884_v10 = vmax.f32 %v1710_v38, 0.0  ;;  %v2283_v32 = vsel %vm2269_vm3, %v2059_v21, %v2052_v51  ;;  %v2063_v14 = vrot.slane %v2062_v56, 2 }
 0x184   :  { %v2071_v62 = vmax.f32 %v2069_v31, %v2070_v63  ;;  %v1425_v41 = vpop.f32.mrb[56].mxu0  ;;  %v2641_v35 = vpop.f32.mrb[56].mxu1  ;;  %v1951_v33 = vsel %vm1925_vm2, %v1882_v39, 0.0 }
 0x185   :  { %v1953_v52 = vsel %vm1925_vm2, %v1884_v10, 0.0  ;;  %v1426_v44 = vadd.f32 %v3964_v15, %v1425_v41  ;;  %v1427_v0 = vpop.f32.mrb[57].mxu0  ;;  %v1714_v53 = vpop.f32.mrb[57].mxu1  ;;  %v2064_v55 = vmax.f32 %v2062_v56, %v2063_v14  ;;  %v2074_v49 = vmax.f32 %v1881_v11, %v1951_v33 }
 0x186   :  { %v2081_v22 = vmax.f32 %v1883_v29, %v1953_v52  ;;  %v1428_v34 = vpop.f32.mrb[58].mxu0  ;;  %v2642_v57 = vpop.f32.mrb[58].mxu1  ;;  %v2072_v54 = vrot.slane %v2071_v62, 1 }
 0x187   :  { %v1429_v60 = vadd.f32 %v3964_v15, %v1428_v34  ;;  %v1715_v17 = vadd.f32 %v1714_v53, %v1426_v44  ;;  %v1430_v24 = vpop.f32.mrb[59].mxu0  ;;  %v1717_v36 = vpop.f32.mrb[59].mxu1  ;;  %v2065_v45 = vrot.slane %v2064_v55, 1  ;;  %v2075_v50 = vrot.slane %v2074_v49, 4 }
 0x188   :  { %v2082_v61 = vrot.slane %v2081_v22, 4  ;;  %v2073_v23 = vmax.f32 %v2071_v62, %v2072_v54 }
 0x189   :  { %v1718_v12 = vadd.f32 %v1717_v36, %v1429_v60  ;;  %v2066_v5 = vmax.f32 %v2064_v55, %v2065_v45  ;;  %v2076_v46 = vmax.f32 %v2074_v49, %v2075_v50  ;;  %v1885_v8 = vmax.f32 %v1715_v17, 0.0 }
 0x18a   :  { %v2083_v13 = vmax.f32 %v2081_v22, %v2082_v61 }
 0x18b   :  { %v1886_v20 = vmax.f32 %v1718_v12, 0.0  ;;  %v2284_v2 = vsel %vm2271_vm4, %v2066_v5, %v2283_v32  ;;  %v2077_v19 = vrot.slane %v2076_v46, 2 }
 0x18c   :  { %v2084_v9 = vrot.slane %v2083_v13, 2  ;;  %v1433_v27 = vpop.f32.mrb[60].mxu0  ;;  %v2645_v43 = vpop.f32.mrb[60].mxu1  ;;  %v2285_v38 = vsel %vm2273_vm5, %v2073_v23, %v2284_v2 }
 0x18d   :  { %v1955_v21 = vsel %vm1925_vm2, %v1886_v20, 0.0  ;;  %v1434_v58 = vadd.f32 %v3964_v15, %v1433_v27  ;;  %v1435_v31 = vpop.f32.mrb[61].mxu0  ;;  %v1730_v7 = vpop.f32.mrb[61].mxu1  ;;  %v2078_v51 = vmax.f32 %v2076_v46, %v2077_v19 }
 0x18e   :  { %v2085_v16 = vmax.f32 %v2083_v13, %v2084_v9  ;;  %v2088_v63 = vmax.f32 %v1885_v8, %v1955_v21  ;;  %v1436_v56 = vpop.f32.mrb[62].mxu0  ;;  %v2646_v29 = vpop.f32.mrb[62].mxu1 }
 0x18f   :  { %v1723_v10 = vadd.f32 %v2641_v35, %v1434_v58  ;;  %v1437_v39 = vadd.f32 %v3964_v15, %v1436_v56  ;;  %v1438_v32 = vpop.f32.mrb[63].mxu0  ;;  %v1733_v62 = vpop.f32.mrb[63].mxu1  ;;  %v2079_v11 = vrot.slane %v2078_v51, 1 }
 0x190   :  { %v2086_v14 = vrot.slane %v2085_v16, 1  ;;  %v2089_v41 = vrot.slane %v2088_v63, 4 }
 0x191   :  { %v1726_v52 = vadd.f32 %v2642_v57, %v1437_v39  ;;  %v2080_v44 = vmax.f32 %v2078_v51, %v2079_v11  ;;  %v1887_v22 = vmax.f32 %v1723_v10, 0.0 }
 0x192   :  { %v2087_v33 = vmax.f32 %v2085_v16, %v2086_v14  ;;  %v2090_v0 = vmax.f32 %v2088_v63, %v2089_v41 }
 0x193   :  { %v1888_v53 = vmax.f32 %v1726_v52, 0.0  ;;  %v2286_v54 = vsel %vm2275_vm6, %v2080_v44, %v2285_v38 }
 0x194   :  { %v2091_v55 = vrot.slane %v2090_v0, 2  ;;  %v1441_v49 = vpop.f32.mrb[64].mxu0  ;;  %v4075_v34 = vpop.f32.mrb[64].mxu1  ;;  %v2287_v57 = vsel %vm2277_vm7, %v2087_v33, %v2286_v54 }
 0x195   :  { %v1957_v35 = vsel %vm1925_vm2, %v1888_v53, 0.0  ;;  %v1442_v60 = vadd.f32 %v3964_v15, %v1441_v49  ;;  %v1443_v17 = vpop.f32.mrb[65].mxu0  ;;  %v1746_v24 = vpop.f32.mrb[65].mxu1 }
 0x196   :  { %v2092_v36 = vmax.f32 %v2090_v0, %v2091_v55  ;;  %v2095_v45 = vmax.f32 %v1887_v22, %v1957_v35  ;;  %v1444_v61 = vpop.f32.mrb[66].mxu0  ;;  %v4082_v50 = vpop.f32.mrb[66].mxu1 }
 0x197   :  { %v1445_v12 = vadd.f32 %v3964_v15, %v1444_v61  ;;  %v1731_v5 = vadd.f32 %v1730_v7, %v1442_v60  ;;  %v1446_v13 = vpop.f32.mrb[67].mxu0  ;;  %v1749_v46 = vpop.f32.mrb[67].mxu1 }
 0x198   :  { %v2093_v23 = vrot.slane %v2092_v36, 1  ;;  %v2096_v20 = vrot.slane %v2095_v45, 4 }
 0x199   :  { %v1734_v2 = vadd.f32 %v1733_v62, %v1445_v12  ;;  %v1889_v21 = vmax.f32 %v1731_v5, 0.0 }
 0x19a   :  { %v2094_v9 = vmax.f32 %v2092_v36, %v2093_v23  ;;  %v2097_v19 = vmax.f32 %v2095_v45, %v2096_v20 }
 0x19b   :  { %v1890_v8 = vmax.f32 %v1734_v2, 0.0 }
 0x19c   :  { %v2098_v27 = vrot.slane %v2097_v19, 2  ;;  %v1449_v58 = vpop.f32.mrb[68].mxu0  ;;  %v4085_v31 = vpop.f32.mrb[68].mxu1  ;;  %v2288_v38 = vsel %vm2279_vm8, %v2094_v9, %v2287_v57 }
 0x19d   :  { %v1959_v16 = vsel %vm1925_vm2, %v1890_v8, 0.0  ;;  %v1450_v7 = vadd.f32 %v3964_v15, %v1449_v58  ;;  %v1451_v51 = vpop.f32.mrb[69].mxu0  ;;  %v4091_v63 = vpop.f32.mrb[69].mxu1  ;;  %v1514_v8 = vadd.f32 %v3964_v15, %v3897_v1 }
 0x19e   :  { %v2099_v56 = vmax.f32 %v2097_v19, %v2098_v27  ;;  %v2102_v10 = vmax.f32 %v1889_v21, %v1959_v16  ;;  %v1452_v39 = vpop.f32.mrb[70].mxu0  ;;  %v4093_v32 = vpop.f32.mrb[70].mxu1 }
 0x19f   :  { %v1739_v62 = vadd.f32 %v2645_v43, %v1450_v7  ;;  %v1453_v14 = vadd.f32 %v3964_v15, %v1452_v39  ;;  %v1454_v11 = vpop.f32.mrb[71].mxu0  ;;  %v4096_v41 = vpop.f32.mrb[71].mxu1 }
 0x1a0   :  { %v2100_v52 = vrot.slane %v2099_v56, 1  ;;  %v2103_v33 = vrot.slane %v2102_v10, 4 }
 0x1a1   :  { %v1742_v44 = vadd.f32 %v2646_v29, %v1453_v14  ;;  %v1891_v22 = vmax.f32 %v1739_v62, 0.0 }
 0x1a2   :  { %v2104_v0 = vmax.f32 %v2102_v10, %v2103_v33  ;;  %v2101_v53 = vmax.f32 %v2099_v56, %v2100_v52 }
 0x1a3   :  { %v1892_v55 = vmax.f32 %v1742_v44, 0.0 }
 0x1a4   :  { %v1457_v49 = vpop.f32.mrb[72].mxu0  ;;  %v2289_v54 = vsel %vm2281_vm9, %v2101_v53, %v2288_v38  ;;  %v4099_v35 = vpop.f32.mrb[72].mxu1  ;;  %v2105_v36 = vrot.slane %v2104_v0, 2 }
 0x1a5   :  { %v1961_v43 = vsel %vm1925_vm2, %v1892_v55, 0.0  ;;  %v1458_v60 = vadd.f32 %v3964_v15, %v1457_v49  ;;  %v1459_v17 = vpop.f32.mrb[73].mxu0  ;;  %2708 = vmatmul.mubr.f32.vlgmr.msra.gmra.mrb[92].mxu1 %v2289_v54  ;;  %v4104_v57 = vpop.f32.mrb[73].mxu1 }
 0x1a6   :  { %v2109_v29 = vmax.f32 %v1891_v22, %v1961_v43  ;;  %v1460_v45 = vpop.f32.mrb[74].mxu0  ;;  %v4106_v61 = vpop.f32.mrb[74].mxu1  ;;  %v2106_v9 = vmax.f32 %v2104_v0, %v2105_v36  ;;  %v1522_v36 = vadd.f32 %v3964_v15, %v3915_v28 }
 0x1a7   :  { %v1747_v12 = vadd.f32 %v1746_v24, %v1458_v60  ;;  %v1461_v5 = vadd.f32 %v3964_v15, %v1460_v45  ;;  %v1462_v13 = vpop.f32.mrb[75].mxu0  ;;  %v4109_v23 = vpop.f32.mrb[75].mxu1  ;;  %v1517_v24 = vadd.f32 %v3964_v15, %v3901_v26 }
 0x1a8   :  { %v2110_v20 = vrot.slane %v2109_v29, 4  ;;  %v2107_v39 = vrot.slane %v2106_v9, 1 }
 0x1a9   :  { %v1750_v2 = vadd.f32 %v1749_v46, %v1461_v5  ;;  %v1893_v58 = vmax.f32 %v1747_v12, 0.0 }
 0x1aa   :  { %v2111_v19 = vmax.f32 %v2109_v29, %v2110_v20  ;;  %v2108_v54 = vmax.f32 %v2106_v9, %v2107_v39  ;;  %v1533_v9 = vadd.f32 %v3964_v15, %v3931_v30 }
 0x1ab   :  { %v1894_v27 = vmax.f32 %v1750_v2, 0.0 }
 0x1ac   :  { %v2112_v21 = vrot.slane %v2111_v19, 2  ;;  %v1465_v38 = vpop.f32.mrb[76].mxu0  ;;  %v2661_v16 = vpop.f32.mrb[76].mxu1 }
 0x1ad   :  { %v1963_v7 = vsel %vm1925_vm2, %v1894_v27, 0.0  ;;  %v1466_v51 = vadd.f32 %v3964_v15, %v1465_v38  ;;  %v1803_v56 = vadd.f32 %v2661_v16, %v1514_v8  ;;  %v1467_v46 = vpop.f32.mrb[77].mxu0  ;;  %v4118_v10 = vpop.f32.mrb[77].mxu1 }
 0x1ae   :  { %v2113_v62 = vmax.f32 %v2111_v19, %v2112_v21  ;;  %v2116_v1 = vmax.f32 %v1893_v58, %v1963_v7  ;;  %v1468_v14 = vpop.f32.mrb[78].mxu0  ;;  %v2662_v11 = vpop.f32.mrb[78].mxu1  ;;  %v1525_v7 = vadd.f32 %v3964_v15, %v3917_v37 }
 0x1af   :  { %v1755_v52 = vadd.f32 %v4075_v34, %v1466_v51  ;;  %v1469_v33 = vadd.f32 %v3964_v15, %v1468_v14  ;;  %v1806_v44 = vadd.f32 %v2662_v11, %v1517_v24  ;;  %v1470_v26 = vpop.f32.mrb[79].mxu0  ;;  %v4122_v0 = vpop.f32.mrb[79].mxu1  ;;  %v1907_v17 = vmax.f32 %v1803_v56, 0.0 }
 0x1b0   :  { %v2114_v53 = vrot.slane %v2113_v62, 1  ;;  %v2117_v55 = vrot.slane %v2116_v1, 4  ;;  %v1530_v34 = vadd.f32 %v3964_v15, %v3927_v4  ;;  %v1538_v14 = vadd.f32 %v3964_v15, %v3933_v25 }
 0x1b1   :  { %v1758_v22 = vadd.f32 %v4082_v50, %v1469_v33  ;;  %v1908_v49 = vmax.f32 %v1806_v44, 0.0  ;;  %v1895_v5 = vmax.f32 %v1755_v52, 0.0  ;;  %v1546_v44 = vadd.f32 %v3964_v15, %v3939_v59 }
 0x1b2   :  { %v2115_v43 = vmax.f32 %v2113_v62, %v2114_v53  ;;  %v2118_v60 = vmax.f32 %v2116_v1, %v2117_v55 }
 0x1b3   :  { %v1896_v29 = vmax.f32 %v1758_v22, 0.0  ;;  %v1977_v45 = vsel %vm1925_vm2, %v1908_v49, 0.0 }
 0x1b4   :  { %v2119_v12 = vrot.slane %v2118_v60, 2  ;;  %v4131_v13 = vmax.f32 %v1907_v17, %v1977_v45  ;;  %v1473_v50 = vpop.f32.mrb[80].mxu0  ;;  %v2665_v20 = vpop.f32.mrb[80].mxu1  ;;  %v2290_v2 = vsel %vm2269_vm3, %v2115_v43, %v2108_v54 }
 0x1b5   :  { %v1965_v28 = vsel %vm1925_vm2, %v1896_v29, 0.0  ;;  %v1474_v4 = vadd.f32 %v3964_v15, %v1473_v50  ;;  %v1819_v19 = vadd.f32 %v2665_v20, %v1530_v34  ;;  %v1475_v8 = vpop.f32.mrb[81].mxu0  ;;  %v1810_v27 = vpop.f32.mrb[81].mxu1 }
 0x1b6   :  { %v2120_v21 = vmax.f32 %v2118_v60, %v2119_v12  ;;  %v2123_v58 = vmax.f32 %v1895_v5, %v1965_v28  ;;  %v1811_v38 = vadd.f32 %v1810_v27, %v1522_v36  ;;  %v1476_v16 = vpop.f32.mrb[82].mxu0  ;;  %v2666_v24 = vpop.f32.mrb[82].mxu1  ;;  %v1549_v27 = vadd.f32 %v3964_v15, %v3943_v40 }
 0x1b7   :  { %v1763_v51 = vadd.f32 %v4091_v63, %v1474_v4  ;;  %v1477_v30 = vadd.f32 %v3964_v15, %v1476_v16  ;;  %v1822_v56 = vadd.f32 %v2666_v24, %v1533_v9  ;;  %v1478_v46 = vpop.f32.mrb[83].mxu0  ;;  %v1813_v39 = vpop.f32.mrb[83].mxu1  ;;  %v1911_v63 = vmax.f32 %v1819_v19, 0.0 }
 0x1b8   :  { %v2121_v62 = vrot.slane %v2120_v21, 1  ;;  %v2124_v1 = vrot.slane %v2123_v58, 4  ;;  %v1814_v33 = vadd.f32 %v1813_v39, %v1525_v7  ;;  %v1909_v53 = vmax.f32 %v1811_v38, 0.0 }
 0x1b9   :  { %v1766_v11 = vadd.f32 %v4096_v41, %v1477_v30  ;;  %v1912_v52 = vmax.f32 %v1822_v56, 0.0  ;;  %v1897_v43 = vmax.f32 %v1763_v51, 0.0  ;;  %v1541_v38 = vadd.f32 %v3964_v15, %v3935_v18 }
 0x1ba   :  { %v2122_v37 = vmax.f32 %v2120_v21, %v2121_v62  ;;  %v2125_v26 = vmax.f32 %v2123_v58, %v2124_v1  ;;  %v1910_v49 = vmax.f32 %v1814_v33, 0.0  ;;  %v1562_v30 = vadd.f32 %v3964_v15, %v3955_v42 }
 0x1bb   :  { %v1898_v55 = vmax.f32 %v1766_v11, 0.0  ;;  %v1981_v22 = vsel %vm1925_vm2, %v1912_v52, 0.0 }
 0x1bc   :  { %v2126_v54 = vrot.slane %v2125_v26, 2  ;;  %v4150_v60 = vmax.f32 %v1911_v63, %v1981_v22  ;;  %v1481_v25 = vpop.f32.mrb[84].mxu0  ;;  %v2669_v41 = vpop.f32.mrb[84].mxu1  ;;  %v2291_v17 = vsel %vm2271_vm4, %v2122_v37, %v2290_v2  ;;  %v1979_v36 = vsel %vm1925_vm2, %v1910_v49, 0.0 }
 0x1bd   :  { %v1967_v59 = vsel %vm1925_vm2, %v1898_v55, 0.0  ;;  %v1482_v34 = vadd.f32 %v3964_v15, %v1481_v25  ;;  %v1835_v29 = vadd.f32 %v2669_v41, %v1546_v44  ;;  %v1483_v45 = vpop.f32.mrb[85].mxu0  ;;  %v1826_v12 = vpop.f32.mrb[85].mxu1  ;;  %v4158_v28 = vmax.f32 %v1909_v53, %v1979_v36 }
 0x1be   :  { %v2127_v5 = vmax.f32 %v2125_v26, %v2126_v54  ;;  %v2130_v50 = vmax.f32 %v1897_v43, %v1967_v59  ;;  %v1484_v20 = vpop.f32.mrb[86].mxu0  ;;  %v2670_v9 = vpop.f32.mrb[86].mxu1  ;;  %v1827_v2 = vadd.f32 %v1826_v12, %v1538_v14  ;;  %v1554_v41 = vadd.f32 %v3964_v15, %v3947_v48 }
 0x1bf   :  { %v1771_v4 = vadd.f32 %v4085_v31, %v1482_v34  ;;  %v1486_v19 = vpop.f32.mrb[87].mxu0  ;;  %v1829_v8 = vpop.f32.mrb[87].mxu1  ;;  %v1485_v16 = vadd.f32 %v3964_v15, %v1484_v20  ;;  %v1838_v51 = vadd.f32 %v2670_v9, %v1549_v27  ;;  %v1915_v39 = vmax.f32 %v1835_v29, 0.0 }
 0x1c0   :  { %v2128_v21 = vrot.slane %v2127_v5, 1  ;;  %v2131_v58 = vrot.slane %v2130_v50, 4  ;;  %v1830_v56 = vadd.f32 %v1829_v8, %v1541_v38  ;;  %v1913_v63 = vmax.f32 %v1827_v2, 0.0 }
 0x1c1   :  { %v1774_v31 = vadd.f32 %v4093_v32, %v1485_v16  ;;  %v1916_v62 = vmax.f32 %v1838_v51, 0.0  ;;  %v1899_v11 = vmax.f32 %v1771_v4, 0.0  ;;  %v1565_v29 = vadd.f32 %v3964_v15, %v3959_v47 }
 0x1c2   :  { %v2129_v24 = vmax.f32 %v2127_v5, %v2128_v21  ;;  %v2132_v7 = vmax.f32 %v2130_v50, %v2131_v58  ;;  %v1914_v52 = vmax.f32 %v1830_v56, 0.0  ;;  %v1557_v50 = vadd.f32 %v3964_v15, %v3951_v3 }
 0x1c3   :  { %v1900_v18 = vmax.f32 %v1774_v31, 0.0  ;;  %v1985_v42 = vsel %vm1925_vm2, %v1916_v62, 0.0 }
 0x1c4   :  { %v2133_v46 = vrot.slane %v2132_v7, 2  ;;  %v1489_v40 = vpop.f32.mrb[88].mxu0  ;;  %v2673_v1 = vpop.f32.mrb[88].mxu1  ;;  %v2292_v14 = vsel %vm2273_vm5, %v2129_v24, %v2291_v17  ;;  %v4175_v49 = vmax.f32 %v1915_v39, %v1985_v42  ;;  %v1983_v54 = vsel %vm1925_vm2, %v1914_v52, 0.0 }
 0x1c5   :  { %v1490_v33 = vadd.f32 %v3964_v15, %v1489_v40  ;;  %v1491_v44 = vpop.f32.mrb[89].mxu0  ;;  %v1842_v37 = vpop.f32.mrb[89].mxu1  ;;  %v1851_v32 = vadd.f32 %v2673_v1, %v1562_v30  ;;  %v1969_v22 = vsel %vm1925_vm2, %v1900_v18, 0.0  ;;  %v4181_v36 = vmax.f32 %v1913_v63, %v1983_v54 }
 0x1c6   :  { %v2134_v26 = vmax.f32 %v2132_v7, %v2133_v46  ;;  %v1492_v53 = vpop.f32.mrb[90].mxu0  ;;  %v2674_v55 = vpop.f32.mrb[90].mxu1  ;;  %v2137_v59 = vmax.f32 %v1899_v11, %v1969_v22  ;;  %v1843_v5 = vadd.f32 %v1842_v37, %v1554_v41  ;;  %v2180_v63 = vrot.slane %v4150_v60, 4 }
 0x1c7   :  { %v1494_v43 = vpop.f32.mrb[91].mxu0  ;;  %v1845_v25 = vpop.f32.mrb[91].mxu1  ;;  %v1779_v34 = vadd.f32 %v4104_v57, %v1490_v33  ;;  %v1493_v20 = vadd.f32 %v3964_v15, %v1492_v53  ;;  %v1854_v4 = vadd.f32 %v2674_v55, %v1565_v29  ;;  %v2908_v57 = vld [vmem:[%s4245_s2] ss:$0 sm:$0xff]  ;;  %v1919_v21 = vmax.f32 %v1851_v32, 0.0 }
 0x1c8   :  { %v2135_v17 = vrot.slane %v2134_v26, 1  ;;  %v2138_v12 = vrot.slane %v2137_v59, 4  ;;  %v1846_v19 = vadd.f32 %v1845_v25, %v1557_v50  ;;  %v1917_v30 = vmax.f32 %v1843_v5, 0.0 }
 0x1c9   :  { %v1782_v2 = vadd.f32 %v4109_v23, %v1493_v20  ;;  %v1920_v58 = vmax.f32 %v1854_v4, 0.0  ;;  %v1901_v16 = vmax.f32 %v1779_v34, 0.0  ;;  %v2166_v33 = vrot.slane %v4131_v13, 4 }
 0x1ca   :  { %v2136_v45 = vmax.f32 %v2134_v26, %v2135_v17  ;;  %v2139_v9 = vmax.f32 %v2137_v59, %v2138_v12  ;;  %v1918_v24 = vmax.f32 %v1846_v19, 0.0  ;;  %v2173_v22 = vrot.slane %v4158_v28, 4 }
 0x1cb   :  { %v1902_v15 = vmax.f32 %v1782_v2, 0.0  ;;  %v1989_v31 = vsel %vm1925_vm2, %v1920_v58, 0.0  ;;  %v2167_v59 = vmax.f32 %v4131_v13, %v2166_v33  ;;  %v2187_v34 = vrot.slane %v4181_v36, 4 }
 0x1cc   :  { %v1497_v48 = vpop.f32.mrb[92].mxu0  ;;  %v2140_v27 = vrot.slane %v2139_v9, 2  ;;  %v2293_v3 = vsel %vm2275_vm6, %v2136_v45, %v2292_v14  ;;  %v2207_v39 = vmax.f32 %v1919_v21, %v1989_v31  ;;  %v1987_v62 = vsel %vm1925_vm2, %v1918_v24, 0.0 }
 0x1cd   :  { %v1498_v8 = vadd.f32 %v2908_v57, %v1497_v48  ;;  %v1499_v47 = vpop.f32.mrb[93].mxu0  ;;  %v1971_v46 = vsel %vm1925_vm2, %v1902_v15, 0.0  ;;  %v2200_v14 = vmax.f32 %v1917_v30, %v1987_v62  ;;  %v2194_v45 = vrot.slane %v4175_v49, 4 }
 0x1ce   :  { %v1500_v38 = vpop.f32.mrb[94].mxu0  ;;  %v2141_v23 = vmax.f32 %v2139_v9, %v2140_v27  ;;  %v2144_v1 = vmax.f32 %v1901_v16, %v1971_v46  ;;  %v2181_v50 = vmax.f32 %v4150_v60, %v2180_v63  ;;  %v2174_v20 = vmax.f32 %v4158_v28, %v2173_v22 }
 0x1cf   :  { %v1787_v7 = vadd.f32 %v4099_v35, %v1498_v8  ;;  %v1502_v51 = vpop.f32.mrb[95].mxu0  ;;  %v1501_v56 = vadd.f32 %v2908_v57, %v1500_v38  ;;  %v2201_v9 = vrot.slane %v2200_v14, 4  ;;  %v2208_v4 = vrot.slane %v2207_v39, 4 }
 0x1d0   :  { %v2142_v40 = vrot.slane %v2141_v23, 1  ;;  %v2145_v35 = vrot.slane %v2144_v1, 4  ;;  %v2188_v13 = vmax.f32 %v4181_v36, %v2187_v34  ;;  %v2195_v8 = vmax.f32 %v4175_v49, %v2194_v45 }
 0x1d1   :  { %v1790_v11 = vadd.f32 %v4106_v61, %v1501_v56  ;;  %v1903_v32 = vmax.f32 %v1787_v7, 0.0  ;;  %v2182_v60 = vrot.slane %v2181_v50, 2  ;;  %v2175_v58 = vrot.slane %v2174_v20, 2 }
 0x1d2   :  { %v2143_v52 = vmax.f32 %v2141_v23, %v2142_v40  ;;  %v2146_v42 = vmax.f32 %v2144_v1, %v2145_v35  ;;  %v2202_v28 = vmax.f32 %v2200_v14, %v2201_v9  ;;  %v2209_v38 = vmax.f32 %v2207_v39, %v2208_v4 }
 0x1d3   :  { %v1904_v44 = vmax.f32 %v1790_v11, 0.0  ;;  %v2189_v24 = vrot.slane %v2188_v13, 2  ;;  %v2196_v51 = vrot.slane %v2195_v8, 2  ;;  %v2176_v6 = vmax.f32 %v2174_v20, %v2175_v58 }
 0x1d4   :  { %v1505_v18 = vpop.f32.mrb[96].mxu0  ;;  %v2294_v55 = vsel %vm2277_vm7, %v2143_v52, %v2293_v3  ;;  %v2147_v41 = vrot.slane %v2146_v42, 2  ;;  %v2203_v30 = vrot.slane %v2202_v28, 2  ;;  %v2183_v31 = vmax.f32 %v2181_v50, %v2182_v60 }
 0x1d5   :  { %v1506_v37 = vadd.f32 %v2908_v57, %v1505_v18  ;;  %v1507_v26 = vpop.f32.mrb[97].mxu0  ;;  %v1973_v61 = vsel %vm1925_vm2, %v1904_v44, 0.0  ;;  %v2210_v49 = vrot.slane %v2209_v38, 2  ;;  %v2190_v62 = vmax.f32 %v2188_v13, %v2189_v24 }
 0x1d6   :  { %v1508_v53 = vpop.f32.mrb[98].mxu0  ;;  %v2151_v17 = vmax.f32 %v1903_v32, %v1973_v61  ;;  %v2148_v12 = vmax.f32 %v2146_v42, %v2147_v41  ;;  %v2197_v1 = vmax.f32 %v2195_v8, %v2196_v51  ;;  %v2177_v11 = vrot.slane %v2176_v6, 1 }
 0x1d7   :  { %v1795_v54 = vadd.f32 %v4118_v10, %v1506_v37  ;;  %v1509_v43 = vadd.f32 %v2908_v57, %v1508_v53  ;;  %v1510_v25 = vpop.f32.mrb[99].mxu0  ;;  %v2168_v57 = vrot.slane %v2167_v59, 2  ;;  %v2204_v35 = vmax.f32 %v2202_v28, %v2203_v30 }
 0x1d8   :  { %v2152_v5 = vrot.slane %v2151_v17, 4  ;;  %v2149_v19 = vrot.slane %v2148_v12, 1  ;;  %v2184_v18 = vrot.slane %v2183_v31, 1  ;;  %v2211_v52 = vmax.f32 %v2209_v38, %v2210_v49 }
 0x1d9   :  { %v1798_v29 = vadd.f32 %v4122_v0, %v1509_v43  ;;  %v1905_v2 = vmax.f32 %v1795_v54, 0.0  ;;  %v2169_v7 = vmax.f32 %v2167_v59, %v2168_v57  ;;  %v2191_v44 = vrot.slane %v2190_v62, 1 }
 0x1da   :  { %v2153_v48 = vmax.f32 %v2151_v17, %v2152_v5  ;;  %v2150_v21 = vmax.f32 %v2148_v12, %v2149_v19  ;;  %v2198_v26 = vrot.slane %v2197_v1, 1  ;;  %v2178_v42 = vmax.f32 %v2176_v6, %v2177_v11  ;;  %v2534_v12 = vld [vmem:[%s4247_s4] ss:$0 sm:$0xff] }
 0x1db   :  { %v1906_v10 = vmax.f32 %v1798_v29, 0.0  ;;  %v2170_v40 = vrot.slane %v2169_v7, 1  ;;  %v2205_v32 = vrot.slane %v2204_v35, 1  ;;  %v2185_v53 = vmax.f32 %v2183_v31, %v2184_v18 }
 0x1dc   :  { %v2154_v47 = vrot.slane %v2153_v48, 2  ;;  %v2295_v15 = vsel %vm2279_vm8, %v2150_v21, %v2294_v55  ;;  %v2212_v55 = vrot.slane %v2211_v52, 1  ;;  %v2192_v61 = vmax.f32 %v2190_v62, %v2191_v44 }
 0x1dd   :  { %v1975_v0 = vsel %vm1925_vm2, %v1906_v10, 0.0  ;;  %v2171_v37 = vmax.f32 %v2169_v7, %v2170_v40  ;;  %v2199_v43 = vmax.f32 %v2197_v1, %v2198_v26  ;;  %v2206_v41 = vmax.f32 %v2204_v35, %v2205_v32 }
 0x1de   :  { %v2158_v27 = vmax.f32 %v1905_v2, %v1975_v0  ;;  %v2155_v16 = vmax.f32 %v2153_v48, %v2154_v47  ;;  %v2213_v59 = vmax.f32 %v2211_v52, %v2212_v55 }
 0x1e0   :  { %v2159_v3 = vrot.slane %v2158_v27, 4  ;;  %v2156_v23 = vrot.slane %v2155_v16, 1 }
 0x1e2   :  { %v2160_v36 = vmax.f32 %v2158_v27, %v2159_v3  ;;  %v2157_v46 = vmax.f32 %v2155_v16, %v2156_v23 }
 0x1e4   :  { %v2161_v56 = vrot.slane %v2160_v36, 2  ;;  %v2296_v39 = vsel %vm2281_vm9, %v2157_v46, %v2295_v15 }
 0x1e5   :  { %2710 = vmatprep.mubr.f32.mxu1 %v2296_v39 }
 0x1e6   :  { %v2162_v14 = vmax.f32 %v2160_v36, %v2161_v56 }
 0x1e8   :  { %v2163_v33 = vrot.slane %v2162_v14, 1 }
 0x1ea   :  { %v2164_v63 = vmax.f32 %v2162_v14, %v2163_v33 }
 0x1ec   :  { %v2297_v22 = vsel %vm2269_vm3, %v2171_v37, %v2164_v63 }
 0x1ed   :  { %v2298_v54 = vsel %vm2271_vm4, %v2178_v42, %v2297_v22 }
 0x1ee   :  { %v2299_v25 = vsel %vm2273_vm5, %v2185_v53, %v2298_v54 }
 0x1ef   :  { %v2300_v17 = vsel %vm2275_vm6, %v2192_v61, %v2299_v25 }
 0x1f0   :  { %v2301_v34 = vsel %vm2277_vm7, %v2199_v43, %v2300_v17 }
 0x1f1   :  { %v2302_v29 = vsel %vm2279_vm8, %v2206_v41, %v2301_v34 }
 0x1f2   :  { %v2303_v45 = vsel %vm2281_vm9, %v2213_v59, %v2302_v29 }
 0x1f3   :  { %2711 = vmatmul.mubr.f32.gmra.mrb[94].mxu1 %v2303_v45 }
 0x278   :  { %v2709_v5 = vpop.f32.mrb[92].mxu1 }
 0x279   :  { %v2380_v50 = vadd.f32 %v2709_v5, %v2534_v12  ;;  %v2374_v20 = vpop.f32.mrb[93].mxu1 }
 0x27a   :  { %v2375_v9 = vadd.f32 %v2534_v12, %v2374_v20 }
 0x27b   :  { %2394 = vst [vmem:[#allocation2 + $0x8] sm:$0xff] %v2380_v50 }
 0x27c   :  { %2393 = vst [vmem:[#allocation2] sm:$0xff] %v2375_v9 }
 0x2c6   :  { %v2712_v10 = vpop.f32.mrb[94].mxu1 }
 0x2c7   :  { %v2390_v4 = vadd.f32 %v2712_v10, %v2534_v12  ;;  %v2384_v48 = vpop.f32.mrb[95].mxu1 }
 0x2c8   :  { %v2385_v2 = vadd.f32 %v2534_v12, %v2384_v48 }
 0x2c9   :  { %2396 = vst [vmem:[#allocation2 + $0x18] sm:$0xff] %v2390_v4 }
 0x2ca   :  { %2395 = vst [vmem:[#allocation2 + $0x10] sm:$0xff] %v2385_v2 }
 0x2cb   :  { %2920 = shalt.err (!%p2917_p4)
}
 0x2cc   :  { %s2921_s15 = scalar_lea.hbm %s4248_s5, 512 }
 0x2cd   :  { %p2922_p5 = scmp.ne.s32.totalorder %s4248_s5, %s2921_s15  ;;  %p2925_p6 = scmp.lt.u32.totalorder %s2921_s15, %s4248_s5 }
 0x2cf   :  { %p2927_p7 = pnand %p2925_p6, %p2922_p5 }
 0x2d1   :  { %2930 = shalt.err (!%p2927_p7)
}
 0x2d2   :  { %s2935_s20 = smov 128   ;;  %s2936_s21 = smov 8  }
 0x2d3   :  { %2408 = dma.vmem_to_hbm [thread:$0]  %s2403_s12, 512, %s4248_s5, [#allocation3], %s2935_s20, %s2935_s20, %s2936_s21  }
 0x2d4   :  { %2931 = dma.done.wait [#allocation3], 512  }
 0x2d5   :  { %2932 = vsyncadd [#allocation3], 4294966784 }
 0x2d6   :  { %2412 = vsyncpa [#allocation3], 1 }

</bundles_post_ra>
